<compile_context>
chip_gen: v6e
topology: v6e:2x2x1
jax: 0.10.0
libtpu: 0.0.40
codegen_flags: <defaults>
</compile_context>

<pallas_src>
import jax
import jax.numpy as jnp
from jax.experimental import pallas as pl
from jax.experimental.pallas import tpu as pltpu

LANE = 128


def _round_up(n, m):
    return ((n + m - 1) // m) * m


def _default_batch_tile():
    # v5e/v5p MXU is 128-wide -> 128-row tiles saturate it; v6e/v7x are 256-wide.
    try:
        kind = jax.devices()[0].device_kind.lower()
    except Exception:
        return 256
    return 128 if "v5" in kind else 256


def mlp_kernel(x_ref,
               w1_ref, b1_ref,
               w2_ref, b2_ref,
               w3_ref, b3_ref,
               w4_ref, b4_ref,
               w5_ref, b5_ref,
               o_ref):
    """One batch tile, full 5-layer forward chain resident in VMEM.

    Matmul inputs are bf16 (MXU), accumulation is f32 (preferred_element_type),
    bias-add + ReLU run in f32 on the VPU (no bf16 elementwise, v5e-safe).
    """
    h = x_ref[...]  # bf16 (batch_tile, in_p)
    for w_ref, b_ref in ((w1_ref, b1_ref), (w2_ref, b2_ref),
                         (w3_ref, b3_ref), (w4_ref, b4_ref)):
        acc = jnp.dot(h, w_ref[...], preferred_element_type=jnp.float32)
        acc = jnp.maximum(acc + b_ref[...], 0.0)       # f32 bias + ReLU
        h = acc.astype(jnp.bfloat16)                   # back to MXU-friendly dtype
    out = jnp.dot(h, w5_ref[...], preferred_element_type=jnp.float32) + b5_ref[...]
    o_ref[...] = out.astype(o_ref.dtype)


def mlp_forward(x, params, *, batch_tile=None):
    """x: (B, input_dim) float32. params: dict of w1..w5 (in,out) and b1..b5 (1,out), f32."""
    if batch_tile is None:
        batch_tile = _default_batch_tile()

    B, input_dim = x.shape
    output_dim = params["w5"].shape[1]

    # ---- pad feature dims to lane multiples, cast weights to bf16 / biases to f32 ----
    layer_names = [("w1", "b1"), ("w2", "b2"), ("w3", "b3"), ("w4", "b4"), ("w5", "b5")]
    padded = []
    for wn, bn in layer_names:
        w, b = params[wn], params[bn]
        fi, fo = w.shape
        fi_p, fo_p = _round_up(fi, LANE), _round_up(fo, LANE)
        w_p = jnp.zeros((fi_p, fo_p), jnp.bfloat16).at[:fi, :fo].set(
            w.astype(jnp.bfloat16))
        b_p = jnp.zeros((1, fo_p), jnp.float32).at[:, :fo].set(
            b.astype(jnp.float32))
        padded.append((w_p, b_p))

    in_p = padded[0][0].shape[0]
    out_p = padded[-1][0].shape[1]

    # ---- pad batch up to a tile multiple (extra rows sliced off afterwards) ----
    b_padded = _round_up(max(B, batch_tile), batch_tile)
    x_p = jnp.zeros((b_padded, in_p), jnp.bfloat16).at[:B, :input_dim].set(
        x.astype(jnp.bfloat16))

    grid = (b_padded // batch_tile,)
    ordered_params = [a for pair in padded for a in pair]

    x_spec = pl.BlockSpec((batch_tile, in_p), lambda i: (i, 0))
    out_spec = pl.BlockSpec((batch_tile, out_p), lambda i: (i, 0))

    # ---- advisory cost estimate for XLA scheduling around the custom call ----
    flops = 2 * b_padded * sum(w.shape[0] * w.shape[1] for w, _ in padded)
    weight_bytes = sum(w.size * w.dtype.itemsize + b.size * b.dtype.itemsize
                       for w, b in padded)
    bytes_accessed = weight_bytes + x_p.size * 2 + b_padded * out_p * 4
    cost = pl.CostEstimate(flops=flops, transcendentals=0,
                           bytes_accessed=bytes_accessed)

    # ---- explicit VMEM budget: resident weights + double-buffered io tiles +
    #      live f32 activations, with headroom; clamped so it fits every generation
    #      (v7x has only 64 MiB per TensorCore). ----
    max_feat = max(w.shape[1] for w, _ in padded)
    est = (weight_bytes
           + 2 * batch_tile * in_p * 2          # double-buffered bf16 input tiles
           + 2 * batch_tile * out_p * 4         # double-buffered f32 output tiles
           + 4 * batch_tile * max_feat * 4)     # live f32 activations (producer/consumer)
    vmem_limit = int(min(64 * 1024 * 1024, max(32 * 1024 * 1024, 2 * est)))

    def build(single_buffer_weights):
        def const_spec(arr):
            # Constant across the grid -> never re-fetched; single buffer halves
            # its VMEM footprint when supported.
            kwargs = {}
            if single_buffer_weights:
                kwargs["pipeline_mode"] = pl.Buffered(1)
            return pl.BlockSpec(arr.shape, lambda i: (0,) * arr.ndim, **kwargs)

        in_specs = [x_spec] + [const_spec(a) for a in ordered_params]
        return pl.pallas_call(
            mlp_kernel,
            out_shape=jax.ShapeDtypeStruct((b_padded, out_p), jnp.float32),
            grid_spec=pltpu.PrefetchScalarGridSpec(
                num_scalar_prefetch=0,
                grid=grid,
                in_specs=in_specs,
                out_specs=out_spec,
            ),
            compiler_params=pltpu.CompilerParams(
                dimension_semantics=("parallel",),
                vmem_limit_bytes=vmem_limit),
            cost_estimate=cost,
        )

    try:
        out_padded = build(True)(x_p, *ordered_params)
    except Exception:
        # pl.Buffered(1) not accepted on this jax build -> fall back to the default
        # double-buffered constant blocks (correctness identical, slightly more VMEM).
        out_padded = build(False)(x_p, *ordered_params)

    return out_padded[:B, :output_dim]


def init_params(key, input_dim, hidden_dim, output_dim):
    """Deterministic init mirroring nn.Linear shapes, stored transposed as (in, out)."""
    dims = [
        (input_dim, hidden_dim),            # fc1
        (hidden_dim, hidden_dim),           # fc2
        (hidden_dim, hidden_dim),           # fc3
        (hidden_dim, hidden_dim // 2),      # fc4
        (hidden_dim // 2, output_dim),      # fc5
    ]
    params = {}
    for idx, (fan_in, fan_out) in enumerate(dims, start=1):
        key, kw, kb = jax.random.split(key, 3)
        bound = 1.0 / (fan_in ** 0.5)
        params[f"w{idx}"] = jax.random.uniform(
            kw, (fan_in, fan_out), jnp.float32, -bound, bound)
        params[f"b{idx}"] = jax.random.uniform(
            kb, (1, fan_out), jnp.float32, -bound, bound)
    return params


def mlp_reference_f32(x, params):
    h = x
    for idx in range(1, 5):
        h = jnp.maximum(h @ params[f"w{idx}"] + params[f"b{idx}"], 0.0)
    return h @ params["w5"] + params["b5"]


def mlp_reference_bf16(x, params):
    """Same bf16-matmul-input / f32-accumulate scheme as the kernel."""
    h = x.astype(jnp.bfloat16)
    for idx in range(1, 5):
        acc = jnp.dot(h, params[f"w{idx}"].astype(jnp.bfloat16),
                      preferred_element_type=jnp.float32) + params[f"b{idx}"]
        h = jnp.maximum(acc, 0.0).astype(jnp.bfloat16)
    return jnp.dot(h, params["w5"].astype(jnp.bfloat16),
                   preferred_element_type=jnp.float32) + params["b5"]


if __name__ == "__main__":
    key = jax.random.PRNGKey(0)
    batch, input_dim, hidden_dim, output_dim = 16, 8, 10, 1

    key, kx = jax.random.split(key)
    x = jax.random.normal(kx, (batch, input_dim), jnp.float32)
    params = init_params(key, input_dim, hidden_dim, output_dim)

    out = mlp_forward(x, params)            # batch_tile auto-selected per TPU generation
    out = jax.block_until_ready(out)

    ref_bf16 = mlp_reference_bf16(x, params)   # precision-matched reference
    ref_f32 = mlp_reference_f32(x, params)     # original-module f32 semantics

    assert out.shape == (batch, output_dim)
    assert jnp.allclose(out, ref_bf16, atol=1e-3, rtol=1e-3), "mismatch vs bf16-matched ref"
    assert jnp.allclose(out, ref_f32, atol=5e-2, rtol=0.0), "drifted too far from f32 ref"

    print("KERNEL_OK")
</pallas_src>

<mosaic_0001>
module attributes {stable_mosaic.version = 11 : i64} {
  func.func @mlp_kernel(%arg0: i32, %arg1: memref<256x128xbf16, #tpu.memory_space<vmem>>, %arg2: memref<128x128xbf16, #tpu.memory_space<vmem>>, %arg3: memref<1x128xf32, #tpu.memory_space<vmem>>, %arg4: memref<128x128xbf16, #tpu.memory_space<vmem>>, %arg5: memref<1x128xf32, #tpu.memory_space<vmem>>, %arg6: memref<128x128xbf16, #tpu.memory_space<vmem>>, %arg7: memref<1x128xf32, #tpu.memory_space<vmem>>, %arg8: memref<128x128xbf16, #tpu.memory_space<vmem>>, %arg9: memref<1x128xf32, #tpu.memory_space<vmem>>, %arg10: memref<128x128xbf16, #tpu.memory_space<vmem>>, %arg11: memref<1x128xf32, #tpu.memory_space<vmem>>, %arg12: memref<256x128xf32, #tpu.memory_space<vmem>>) attributes {dimension_semantics = [#tpu.dimension_semantics<parallel>], iteration_bounds = array<i64: 1>, scalar_prefetch = 0 : i64, scratch_operands = 0 : i64, tpu.core_type = #tpu.core_type<tc>, window_params = [{transform_indices = @transform_0, window_bounds = array<i64: 256, 128>}, {pipeline_mode = #tpu.pipeline_mode<synchronous>, transform_indices = @transform_1, window_bounds = array<i64: 128, 128>}, {pipeline_mode = #tpu.pipeline_mode<synchronous>, transform_indices = @transform_2, window_bounds = array<i64: 1, 128>}, {pipeline_mode = #tpu.pipeline_mode<synchronous>, transform_indices = @transform_3, window_bounds = array<i64: 128, 128>}, {pipeline_mode = #tpu.pipeline_mode<synchronous>, transform_indices = @transform_4, window_bounds = array<i64: 1, 128>}, {pipeline_mode = #tpu.pipeline_mode<synchronous>, transform_indices = @transform_5, window_bounds = array<i64: 128, 128>}, {pipeline_mode = #tpu.pipeline_mode<synchronous>, transform_indices = @transform_6, window_bounds = array<i64: 1, 128>}, {pipeline_mode = #tpu.pipeline_mode<synchronous>, transform_indices = @transform_7, window_bounds = array<i64: 128, 128>}, {pipeline_mode = #tpu.pipeline_mode<synchronous>, transform_indices = @transform_8, window_bounds = array<i64: 1, 128>}, {pipeline_mode = #tpu.pipeline_mode<synchronous>, transform_indices = @transform_9, window_bounds = array<i64: 128, 128>}, {pipeline_mode = #tpu.pipeline_mode<synchronous>, transform_indices = @transform_10, window_bounds = array<i64: 1, 128>}, {transform_indices = @transform_11, window_bounds = array<i64: 256, 128>}]} {
    %c0 = arith.constant 0 : index
    %c0_0 = arith.constant 0 : index
    %0 = vector.load %arg1[%c0, %c0_0] : memref<256x128xbf16, #tpu.memory_space<vmem>>, vector<256x128xbf16>
    %c0_1 = arith.constant 0 : index
    %c0_2 = arith.constant 0 : index
    %1 = vector.load %arg2[%c0_1, %c0_2] : memref<128x128xbf16, #tpu.memory_space<vmem>>, vector<128x128xbf16>
    %cst = arith.constant dense<0.000000e+00> : vector<256x128xf32>
    %2 = tpu.matmul %0, %1, %cst {dimension_numbers = #tpu.dot_dimension_numbers<[1], [0], [0], [1], [0, 0, 1, 1], [], []>} : vector<256x128xbf16>, vector<128x128xbf16>, vector<256x128xf32> -> vector<256x128xf32>
    %c0_3 = arith.constant 0 : index
    %c0_4 = arith.constant 0 : index
    %3 = vector.load %arg3[%c0_3, %c0_4] : memref<1x128xf32, #tpu.memory_space<vmem>>, vector<1x128xf32>
    %4 = vector.broadcast %3 : vector<1x128xf32> to vector<256x128xf32>
    %5 = arith.addf %2, %4 : vector<256x128xf32>
    %cst_5 = arith.constant 0.000000e+00 : f32
    %6 = vector.broadcast %cst_5 : f32 to vector<256x128xf32>
    %7 = arith.maximumf %5, %6 : vector<256x128xf32>
    %8 = arith.truncf %7 : vector<256x128xf32> to vector<256x128xbf16>
    %c0_6 = arith.constant 0 : index
    %c0_7 = arith.constant 0 : index
    %9 = vector.load %arg4[%c0_6, %c0_7] : memref<128x128xbf16, #tpu.memory_space<vmem>>, vector<128x128xbf16>
    %cst_8 = arith.constant dense<0.000000e+00> : vector<256x128xf32>
    %10 = tpu.matmul %8, %9, %cst_8 {dimension_numbers = #tpu.dot_dimension_numbers<[1], [0], [0], [1], [0, 0, 1, 1], [], []>} : vector<256x128xbf16>, vector<128x128xbf16>, vector<256x128xf32> -> vector<256x128xf32>
    %c0_9 = arith.constant 0 : index
    %c0_10 = arith.constant 0 : index
    %11 = vector.load %arg5[%c0_9, %c0_10] : memref<1x128xf32, #tpu.memory_space<vmem>>, vector<1x128xf32>
    %12 = vector.broadcast %11 : vector<1x128xf32> to vector<256x128xf32>
    %13 = arith.addf %10, %12 : vector<256x128xf32>
    %cst_11 = arith.constant 0.000000e+00 : f32
    %14 = vector.broadcast %cst_11 : f32 to vector<256x128xf32>
    %15 = arith.maximumf %13, %14 : vector<256x128xf32>
    %16 = arith.truncf %15 : vector<256x128xf32> to vector<256x128xbf16>
    %c0_12 = arith.constant 0 : index
    %c0_13 = arith.constant 0 : index
    %17 = vector.load %arg6[%c0_12, %c0_13] : memref<128x128xbf16, #tpu.memory_space<vmem>>, vector<128x128xbf16>
    %cst_14 = arith.constant dense<0.000000e+00> : vector<256x128xf32>
    %18 = tpu.matmul %16, %17, %cst_14 {dimension_numbers = #tpu.dot_dimension_numbers<[1], [0], [0], [1], [0, 0, 1, 1], [], []>} : vector<256x128xbf16>, vector<128x128xbf16>, vector<256x128xf32> -> vector<256x128xf32>
    %c0_15 = arith.constant 0 : index
    %c0_16 = arith.constant 0 : index
    %19 = vector.load %arg7[%c0_15, %c0_16] : memref<1x128xf32, #tpu.memory_space<vmem>>, vector<1x128xf32>
    %20 = vector.broadcast %19 : vector<1x128xf32> to vector<256x128xf32>
    %21 = arith.addf %18, %20 : vector<256x128xf32>
    %cst_17 = arith.constant 0.000000e+00 : f32
    %22 = vector.broadcast %cst_17 : f32 to vector<256x128xf32>
    %23 = arith.maximumf %21, %22 : vector<256x128xf32>
    %24 = arith.truncf %23 : vector<256x128xf32> to vector<256x128xbf16>
    %c0_18 = arith.constant 0 : index
    %c0_19 = arith.constant 0 : index
    %25 = vector.load %arg8[%c0_18, %c0_19] : memref<128x128xbf16, #tpu.memory_space<vmem>>, vector<128x128xbf16>
    %cst_20 = arith.constant dense<0.000000e+00> : vector<256x128xf32>
    %26 = tpu.matmul %24, %25, %cst_20 {dimension_numbers = #tpu.dot_dimension_numbers<[1], [0], [0], [1], [0, 0, 1, 1], [], []>} : vector<256x128xbf16>, vector<128x128xbf16>, vector<256x128xf32> -> vector<256x128xf32>
    %c0_21 = arith.constant 0 : index
    %c0_22 = arith.constant 0 : index
    %27 = vector.load %arg9[%c0_21, %c0_22] : memref<1x128xf32, #tpu.memory_space<vmem>>, vector<1x128xf32>
    %28 = vector.broadcast %27 : vector<1x128xf32> to vector<256x128xf32>
    %29 = arith.addf %26, %28 : vector<256x128xf32>
    %cst_23 = arith.constant 0.000000e+00 : f32
    %30 = vector.broadcast %cst_23 : f32 to vector<256x128xf32>
    %31 = arith.maximumf %29, %30 : vector<256x128xf32>
    %32 = arith.truncf %31 : vector<256x128xf32> to vector<256x128xbf16>
    %c0_24 = arith.constant 0 : index
    %c0_25 = arith.constant 0 : index
    %33 = vector.load %arg10[%c0_24, %c0_25] : memref<128x128xbf16, #tpu.memory_space<vmem>>, vector<128x128xbf16>
    %cst_26 = arith.constant dense<0.000000e+00> : vector<256x128xf32>
    %34 = tpu.matmul %32, %33, %cst_26 {dimension_numbers = #tpu.dot_dimension_numbers<[1], [0], [0], [1], [0, 0, 1, 1], [], []>} : vector<256x128xbf16>, vector<128x128xbf16>, vector<256x128xf32> -> vector<256x128xf32>
    %c0_27 = arith.constant 0 : index
    %c0_28 = arith.constant 0 : index
    %35 = vector.load %arg11[%c0_27, %c0_28] : memref<1x128xf32, #tpu.memory_space<vmem>>, vector<1x128xf32>
    %36 = vector.broadcast %35 : vector<1x128xf32> to vector<256x128xf32>
    %37 = arith.addf %34, %36 : vector<256x128xf32>
    %c0_29 = arith.constant 0 : index
    %c0_30 = arith.constant 0 : index
    %38 = vector.load %arg12[%c0_29, %c0_30] : memref<256x128xf32, #tpu.memory_space<vmem>>, vector<256x128xf32>
    tpu.vector_store %arg12[%c0_29, %c0_30], %37 {strides = array<i32>} : memref<256x128xf32, #tpu.memory_space<vmem>>, vector<256x128xf32>,
    return
  }
  func.func @transform_0(%arg0: i32) -> (i32, i32) {
    %c0_i32 = arith.constant 0 : i32
    %c0_i32_0 = arith.constant 0 : i32
    return %arg0, %c0_i32 : i32, i32
  }
  func.func @transform_1(%arg0: i32) -> (i32, i32) {
    %c0_i32 = arith.constant 0 : i32
    %c0_i32_0 = arith.constant 0 : i32
    %c0_i32_1 = arith.constant 0 : i32
    return %c0_i32, %c0_i32_0 : i32, i32
  }
  func.func @transform_2(%arg0: i32) -> (i32, i32) {
    %c0_i32 = arith.constant 0 : i32
    %c0_i32_0 = arith.constant 0 : i32
    %c0_i32_1 = arith.constant 0 : i32
    return %c0_i32, %c0_i32_0 : i32, i32
  }
  func.func @transform_3(%arg0: i32) -> (i32, i32) {
    %c0_i32 = arith.constant 0 : i32
    %c0_i32_0 = arith.constant 0 : i32
    %c0_i32_1 = arith.constant 0 : i32
    return %c0_i32, %c0_i32_0 : i32, i32
  }
  func.func @transform_4(%arg0: i32) -> (i32, i32) {
    %c0_i32 = arith.constant 0 : i32
    %c0_i32_0 = arith.constant 0 : i32
    %c0_i32_1 = arith.constant 0 : i32
    return %c0_i32, %c0_i32_0 : i32, i32
  }
  func.func @transform_5(%arg0: i32) -> (i32, i32) {
    %c0_i32 = arith.constant 0 : i32
    %c0_i32_0 = arith.constant 0 : i32
    %c0_i32_1 = arith.constant 0 : i32
    return %c0_i32, %c0_i32_0 : i32, i32
  }
  func.func @transform_6(%arg0: i32) -> (i32, i32) {
    %c0_i32 = arith.constant 0 : i32
    %c0_i32_0 = arith.constant 0 : i32
    %c0_i32_1 = arith.constant 0 : i32
    return %c0_i32, %c0_i32_0 : i32, i32
  }
  func.func @transform_7(%arg0: i32) -> (i32, i32) {
    %c0_i32 = arith.constant 0 : i32
    %c0_i32_0 = arith.constant 0 : i32
    %c0_i32_1 = arith.constant 0 : i32
    return %c0_i32, %c0_i32_0 : i32, i32
  }
  func.func @transform_8(%arg0: i32) -> (i32, i32) {
    %c0_i32 = arith.constant 0 : i32
    %c0_i32_0 = arith.constant 0 : i32
    %c0_i32_1 = arith.constant 0 : i32
    return %c0_i32, %c0_i32_0 : i32, i32
  }
  func.func @transform_9(%arg0: i32) -> (i32, i32) {
    %c0_i32 = arith.constant 0 : i32
    %c0_i32_0 = arith.constant 0 : i32
    %c0_i32_1 = arith.constant 0 : i32
    return %c0_i32, %c0_i32_0 : i32, i32
  }
  func.func @transform_10(%arg0: i32) -> (i32, i32) {
    %c0_i32 = arith.constant 0 : i32
    %c0_i32_0 = arith.constant 0 : i32
    %c0_i32_1 = arith.constant 0 : i32
    return %c0_i32, %c0_i32_0 : i32, i32
  }
  func.func @transform_11(%arg0: i32) -> (i32, i32) {
    %c0_i32 = arith.constant 0 : i32
    %c0_i32_0 = arith.constant 0 : i32
    return %arg0, %c0_i32 : i32, i32
  }
}

module attributes {stable_mosaic.version = 11 : i64} {
  func.func @mlp_kernel(%arg0: i32, %arg1: memref<256x128xbf16, #tpu.memory_space<vmem>>, %arg2: memref<128x128xbf16, #tpu.memory_space<vmem>>, %arg3: memref<1x128xf32, #tpu.memory_space<vmem>>, %arg4: memref<128x128xbf16, #tpu.memory_space<vmem>>, %arg5: memref<1x128xf32, #tpu.memory_space<vmem>>, %arg6: memref<128x128xbf16, #tpu.memory_space<vmem>>, %arg7: memref<1x128xf32, #tpu.memory_space<vmem>>, %arg8: memref<128x128xbf16, #tpu.memory_space<vmem>>, %arg9: memref<1x128xf32, #tpu.memory_space<vmem>>, %arg10: memref<128x128xbf16, #tpu.memory_space<vmem>>, %arg11: memref<1x128xf32, #tpu.memory_space<vmem>>, %arg12: memref<256x128xf32, #tpu.memory_space<vmem>>) attributes {dimension_semantics = [#tpu.dimension_semantics<parallel>], iteration_bounds = array<i64: 1>, scalar_prefetch = 0 : i64, scratch_operands = 0 : i64, tpu.core_type = #tpu.core_type<tc>, window_params = [{transform_indices = @transform_0, window_bounds = array<i64: 256, 128>}, {pipeline_mode = #tpu.pipeline_mode<synchronous>, transform_indices = @transform_1, window_bounds = array<i64: 128, 128>}, {pipeline_mode = #tpu.pipeline_mode<synchronous>, transform_indices = @transform_2, window_bounds = array<i64: 1, 128>}, {pipeline_mode = #tpu.pipeline_mode<synchronous>, transform_indices = @transform_3, window_bounds = array<i64: 128, 128>}, {pipeline_mode = #tpu.pipeline_mode<synchronous>, transform_indices = @transform_4, window_bounds = array<i64: 1, 128>}, {pipeline_mode = #tpu.pipeline_mode<synchronous>, transform_indices = @transform_5, window_bounds = array<i64: 128, 128>}, {pipeline_mode = #tpu.pipeline_mode<synchronous>, transform_indices = @transform_6, window_bounds = array<i64: 1, 128>}, {pipeline_mode = #tpu.pipeline_mode<synchronous>, transform_indices = @transform_7, window_bounds = array<i64: 128, 128>}, {pipeline_mode = #tpu.pipeline_mode<synchronous>, transform_indices = @transform_8, window_bounds = array<i64: 1, 128>}, {pipeline_mode = #tpu.pipeline_mode<synchronous>, transform_indices = @transform_9, window_bounds = array<i64: 128, 128>}, {pipeline_mode = #tpu.pipeline_mode<synchronous>, transform_indices = @transform_10, window_bounds = array<i64: 1, 128>}, {transform_indices = @transform_11, window_bounds = array<i64: 256, 128>}]} {
    %c0 = arith.constant 0 : index
    %c0_0 = arith.constant 0 : index
    %0 = vector.load %arg1[%c0, %c0_0] : memref<256x128xbf16, #tpu.memory_space<vmem>>, vector<256x128xbf16>
    %c0_1 = arith.constant 0 : index
    %c0_2 = arith.constant 0 : index
    %1 = vector.load %arg2[%c0_1, %c0_2] : memref<128x128xbf16, #tpu.memory_space<vmem>>, vector<128x128xbf16>
    %cst = arith.constant dense<0.000000e+00> : vector<256x128xf32>
    %2 = tpu.matmul %0, %1, %cst {dimension_numbers = #tpu.dot_dimension_numbers<[1], [0], [0], [1], [0, 0, 1, 1], [], []>} : vector<256x128xbf16>, vector<128x128xbf16>, vector<256x128xf32> -> vector<256x128xf32>
    %c0_3 = arith.constant 0 : index
    %c0_4 = arith.constant 0 : index
    %3 = vector.load %arg3[%c0_3, %c0_4] : memref<1x128xf32, #tpu.memory_space<vmem>>, vector<1x128xf32>
    %4 = vector.broadcast %3 : vector<1x128xf32> to vector<256x128xf32>
    %5 = arith.addf %2, %4 : vector<256x128xf32>
    %cst_5 = arith.constant 0.000000e+00 : f32
    %6 = vector.broadcast %cst_5 : f32 to vector<256x128xf32>
    %7 = arith.maximumf %5, %6 : vector<256x128xf32>
    %8 = arith.truncf %7 : vector<256x128xf32> to vector<256x128xbf16>
    %c0_6 = arith.constant 0 : index
    %c0_7 = arith.constant 0 : index
    %9 = vector.load %arg4[%c0_6, %c0_7] : memref<128x128xbf16, #tpu.memory_space<vmem>>, vector<128x128xbf16>
    %cst_8 = arith.constant dense<0.000000e+00> : vector<256x128xf32>
    %10 = tpu.matmul %8, %9, %cst_8 {dimension_numbers = #tpu.dot_dimension_numbers<[1], [0], [0], [1], [0, 0, 1, 1], [], []>} : vector<256x128xbf16>, vector<128x128xbf16>, vector<256x128xf32> -> vector<256x128xf32>
    %c0_9 = arith.constant 0 : index
    %c0_10 = arith.constant 0 : index
    %11 = vector.load %arg5[%c0_9, %c0_10] : memref<1x128xf32, #tpu.memory_space<vmem>>, vector<1x128xf32>
    %12 = vector.broadcast %11 : vector<1x128xf32> to vector<256x128xf32>
    %13 = arith.addf %10, %12 : vector<256x128xf32>
    %cst_11 = arith.constant 0.000000e+00 : f32
    %14 = vector.broadcast %cst_11 : f32 to vector<256x128xf32>
    %15 = arith.maximumf %13, %14 : vector<256x128xf32>
    %16 = arith.truncf %15 : vector<256x128xf32> to vector<256x128xbf16>
    %c0_12 = arith.constant 0 : index
    %c0_13 = arith.constant 0 : index
    %17 = vector.load %arg6[%c0_12, %c0_13] : memref<128x128xbf16, #tpu.memory_space<vmem>>, vector<128x128xbf16>
    %cst_14 = arith.constant dense<0.000000e+00> : vector<256x128xf32>
    %18 = tpu.matmul %16, %17, %cst_14 {dimension_numbers = #tpu.dot_dimension_numbers<[1], [0], [0], [1], [0, 0, 1, 1], [], []>} : vector<256x128xbf16>, vector<128x128xbf16>, vector<256x128xf32> -> vector<256x128xf32>
    %c0_15 = arith.constant 0 : index
    %c0_16 = arith.constant 0 : index
    %19 = vector.load %arg7[%c0_15, %c0_16] : memref<1x128xf32, #tpu.memory_space<vmem>>, vector<1x128xf32>
    %20 = vector.broadcast %19 : vector<1x128xf32> to vector<256x128xf32>
    %21 = arith.addf %18, %20 : vector<256x128xf32>
    %cst_17 = arith.constant 0.000000e+00 : f32
    %22 = vector.broadcast %cst_17 : f32 to vector<256x128xf32>
    %23 = arith.maximumf %21, %22 : vector<256x128xf32>
    %24 = arith.truncf %23 : vector<256x128xf32> to vector<256x128xbf16>
    %c0_18 = arith.constant 0 : index
    %c0_19 = arith.constant 0 : index
    %25 = vector.load %arg8[%c0_18, %c0_19] : memref<128x128xbf16, #tpu.memory_space<vmem>>, vector<128x128xbf16>
    %cst_20 = arith.constant dense<0.000000e+00> : vector<256x128xf32>
    %26 = tpu.matmul %24, %25, %cst_20 {dimension_numbers = #tpu.dot_dimension_numbers<[1], [0], [0], [1], [0, 0, 1, 1], [], []>} : vector<256x128xbf16>, vector<128x128xbf16>, vector<256x128xf32> -> vector<256x128xf32>
    %c0_21 = arith.constant 0 : index
    %c0_22 = arith.constant 0 : index
    %27 = vector.load %arg9[%c0_21, %c0_22] : memref<1x128xf32, #tpu.memory_space<vmem>>, vector<1x128xf32>
    %28 = vector.broadcast %27 : vector<1x128xf32> to vector<256x128xf32>
    %29 = arith.addf %26, %28 : vector<256x128xf32>
    %cst_23 = arith.constant 0.000000e+00 : f32
    %30 = vector.broadcast %cst_23 : f32 to vector<256x128xf32>
    %31 = arith.maximumf %29, %30 : vector<256x128xf32>
    %32 = arith.truncf %31 : vector<256x128xf32> to vector<256x128xbf16>
    %c0_24 = arith.constant 0 : index
    %c0_25 = arith.constant 0 : index
    %33 = vector.load %arg10[%c0_24, %c0_25] : memref<128x128xbf16, #tpu.memory_space<vmem>>, vector<128x128xbf16>
    %cst_26 = arith.constant dense<0.000000e+00> : vector<256x128xf32>
    %34 = tpu.matmul %32, %33, %cst_26 {dimension_numbers = #tpu.dot_dimension_numbers<[1], [0], [0], [1], [0, 0, 1, 1], [], []>} : vector<256x128xbf16>, vector<128x128xbf16>, vector<256x128xf32> -> vector<256x128xf32>
    %c0_27 = arith.constant 0 : index
    %c0_28 = arith.constant 0 : index
    %35 = vector.load %arg11[%c0_27, %c0_28] : memref<1x128xf32, #tpu.memory_space<vmem>>, vector<1x128xf32>
    %36 = vector.broadcast %35 : vector<1x128xf32> to vector<256x128xf32>
    %37 = arith.addf %34, %36 : vector<256x128xf32>
    %c0_29 = arith.constant 0 : index
    %c0_30 = arith.constant 0 : index
    %38 = vector.load %arg12[%c0_29, %c0_30] : memref<256x128xf32, #tpu.memory_space<vmem>>, vector<256x128xf32>
    tpu.vector_store %arg12[%c0_29, %c0_30], %37 {strides = array<i32>} : memref<256x128xf32, #tpu.memory_space<vmem>>, vector<256x128xf32>,
    return
  }
  func.func @transform_0(%arg0: i32) -> (i32, i32) {
    %c0_i32 = arith.constant 0 : i32
    %c0_i32_0 = arith.constant 0 : i32
    return %arg0, %c0_i32 : i32, i32
  }
  func.func @transform_1(%arg0: i32) -> (i32, i32) {
    %c0_i32 = arith.constant 0 : i32
    %c0_i32_0 = arith.constant 0 : i32
    %c0_i32_1 = arith.constant 0 : i32
    return %c0_i32, %c0_i32_0 : i32, i32
  }
  func.func @transform_2(%arg0: i32) -> (i32, i32) {
    %c0_i32 = arith.constant 0 : i32
    %c0_i32_0 = arith.constant 0 : i32
    %c0_i32_1 = arith.constant 0 : i32
    return %c0_i32, %c0_i32_0 : i32, i32
  }
  func.func @transform_3(%arg0: i32) -> (i32, i32) {
    %c0_i32 = arith.constant 0 : i32
    %c0_i32_0 = arith.constant 0 : i32
    %c0_i32_1 = arith.constant 0 : i32
    return %c0_i32, %c0_i32_0 : i32, i32
  }
  func.func @transform_4(%arg0: i32) -> (i32, i32) {
    %c0_i32 = arith.constant 0 : i32
    %c0_i32_0 = arith.constant 0 : i32
    %c0_i32_1 = arith.constant 0 : i32
    return %c0_i32, %c0_i32_0 : i32, i32
  }
  func.func @transform_5(%arg0: i32) -> (i32, i32) {
    %c0_i32 = arith.constant 0 : i32
    %c0_i32_0 = arith.constant 0 : i32
    %c0_i32_1 = arith.constant 0 : i32
    return %c0_i32, %c0_i32_0 : i32, i32
  }
  func.func @transform_6(%arg0: i32) -> (i32, i32) {
    %c0_i32 = arith.constant 0 : i32
    %c0_i32_0 = arith.constant 0 : i32
    %c0_i32_1 = arith.constant 0 : i32
    return %c0_i32, %c0_i32_0 : i32, i32
  }
  func.func @transform_7(%arg0: i32) -> (i32, i32) {
    %c0_i32 = arith.constant 0 : i32
    %c0_i32_0 = arith.constant 0 : i32
    %c0_i32_1 = arith.constant 0 : i32
    return %c0_i32, %c0_i32_0 : i32, i32
  }
  func.func @transform_8(%arg0: i32) -> (i32, i32) {
    %c0_i32 = arith.constant 0 : i32
    %c0_i32_0 = arith.constant 0 : i32
    %c0_i32_1 = arith.constant 0 : i32
    return %c0_i32, %c0_i32_0 : i32, i32
  }
  func.func @transform_9(%arg0: i32) -> (i32, i32) {
    %c0_i32 = arith.constant 0 : i32
    %c0_i32_0 = arith.constant 0 : i32
    %c0_i32_1 = arith.constant 0 : i32
    return %c0_i32, %c0_i32_0 : i32, i32
  }
  func.func @transform_10(%arg0: i32) -> (i32, i32) {
    %c0_i32 = arith.constant 0 : i32
    %c0_i32_0 = arith.constant 0 : i32
    %c0_i32_1 = arith.constant 0 : i32
    return %c0_i32, %c0_i32_0 : i32, i32
  }
  func.func @transform_11(%arg0: i32) -> (i32, i32) {
    %c0_i32 = arith.constant 0 : i32
    %c0_i32_0 = arith.constant 0 : i32
    return %arg0, %c0_i32 : i32, i32
  }
}

</mosaic_0001>

<bundles_post_ra>
// kernel: tpu_custom_call.1
= control target key start
LH: loop header
LB: loop body
LE: loop exit
PB: predicated region body
PF: predicated region fallthrough
CT: control target
= control target key end

     0   :  { %16 = vsyncpa [#allocation3], 0  ;;  %s2618_s0 = inlined_call_operand.hbm [shape: bf16[256,128], index: 0, kind: input, shape index: {}]   ;;  %s2619_s1 = inlined_call_operand.hbm [shape: bf16[128,128], index: 1, kind: input, shape index: {}]   ;;  %s2620_s2 = inlined_call_operand.vmem [shape: f32[1,128], index: 2, kind: input, shape index: {}]   ;;  %s2621_s3 = inlined_call_operand.hbm [shape: bf16[128,128], index: 3, kind: input, shape index: {}]   ;;  %s2622_s4 = inlined_call_operand.vmem [shape: f32[1,128], index: 4, kind: input, shape index: {}]   ;;  %s2623_s5 = inlined_call_operand.hbm [shape: bf16[128,128], index: 5, kind: input, shape index: {}]   ;;  %s2624_s6 = inlined_call_operand.vmem [shape: f32[1,128], index: 6, kind: input, shape index: {}]   ;;  %s2625_s7 = inlined_call_operand.hbm [shape: bf16[128,128], index: 7, kind: input, shape index: {}]   ;;  %s2626_s8 = inlined_call_operand.vmem [shape: f32[1,128], index: 8, kind: input, shape index: {}]   ;;  %s2627_s9 = inlined_call_operand.hbm [shape: bf16[128,128], index: 9, kind: input, shape index: {}]   ;;  %s2628_s10 = inlined_call_operand.vmem [shape: f32[1,128], index: 10, kind: input, shape index: {}]   ;;  %s2629_s11 = inlined_call_operand.hbm [shape: f32[256,128], index: 11, kind: output, shape index: {}]  }
   0x1   :  { %17 = vsyncpa [#allocation6], 0 }
   0x2   :  { %18 = vsyncpa [#allocation9], 0 }
   0x3   :  { %19 = vsyncpa [#allocation12], 0 }
   0x4   :  { %20 = vsyncpa [#allocation4], 0  ;;  %s2308_s17 = smov [#allocation5]   ;;  %s2309_s19 = smov [#allocation8]  }
   0x5   :  { %s38_s18 = sshll.u32 %s2308_s17, 4  ;;  %s66_s20 = sshll.u32 %s2309_s19, 4  ;;  %s39_s18 = int_to_ptr.vmem [resolvable:$true] %s38_s18  ;;  %s67_s20 = int_to_ptr.vmem [resolvable:$true] %s66_s20 }
   0x6   :  { %s2166_s21 = scalar_lea.vmem %s39_s18, 1024  ;;  %p2171_p1 = scmp.lt.s32.totalorder %s39_s18, %s39_s18 }
   0x7   :  { %p2167_p0 = scmp.ne.s32.totalorder %s39_s18, %s2166_s21  ;;  %p2172_p2 = scmp.lt.s32.totalorder %s2166_s21, %s2166_s21 }
   0x9   :  { %p2173_p3 = por %p2172_p2, %p2171_p1 }
   0xb   :  { %p2174_p4 = pnand %p2173_p3, %p2167_p0 }
   0xd   :  { %2177 = shalt.err (!%p2174_p4)
}
   0xe   :  { %s2310_s22 = smov 64   ;;  %s2311_s23 = smov 4  }
   0xf   :  { %44 = dma.hbm_to_vmem [thread:$0]  %s2619_s1, 1024, %s39_s18, [#allocation6], %s2310_s22, %s2310_s22, %s2311_s23  }
  0x10   :  { %s2186_s26 = scalar_lea.vmem %s67_s20, 1024  ;;  %p2191_p6 = scmp.lt.s32.totalorder %s67_s20, %s67_s20 }
  0x11   :  { %p2187_p5 = scmp.ne.s32.totalorder %s67_s20, %s2186_s26  ;;  %p2192_p7 = scmp.lt.s32.totalorder %s2186_s26, %s2186_s26 }
  0x13   :  { %p2193_p8 = por %p2192_p7, %p2191_p6 }
  0x15   :  { %p2194_p9 = pnand %p2193_p8, %p2187_p5 }
  0x17   :  { %2197 = shalt.err (!%p2194_p9)
}
  0x18   :  { %72 = dma.hbm_to_vmem [thread:$0]  %s2623_s5, 1024, %s67_s20, [#allocation9], %s2310_s22, %s2310_s22, %s2311_s23  }
  0x19   :  { %s2312_s29 = smov [#allocation2]   ;;  %s2313_s12 = smov [#allocation7]  }
  0x1a   :  { %s26_s30 = sshll.u32 %s2312_s29, 4  ;;  %s52_s13 = sshll.u32 %s2313_s12, 4  ;;  %s27_s30 = int_to_ptr.vmem [resolvable:$true] %s26_s30  ;;  %s53_s13 = int_to_ptr.vmem [resolvable:$true] %s52_s13 }
  0x1b   :  { %s2206_s1 = scalar_lea.vmem %s27_s30, 2048  ;;  %p2211_p11 = scmp.lt.s32.totalorder %s27_s30, %s27_s30 }
  0x1c   :  { %p2207_p10 = scmp.ne.s32.totalorder %s27_s30, %s2206_s1  ;;  %p2212_p12 = scmp.lt.s32.totalorder %s2206_s1, %s2206_s1 }
  0x1e   :  { %p2213_p13 = por %p2212_p12, %p2211_p11 }
  0x20   :  { %p2214_p0 = pnand %p2213_p13, %p2207_p10 }
  0x22   :  { %2217 = shalt.err (!%p2214_p0)
}
  0x23   :  { %32 = dma.hbm_to_vmem [thread:$0]  %s2618_s0, 2048, %s27_s30, [#allocation3], %s2310_s22, %s2310_s22, %s2311_s23  }
  0x24   :  { %s2226_s5 = scalar_lea.vmem %s53_s13, 1024  ;;  %p2231_p2 = scmp.lt.s32.totalorder %s53_s13, %s53_s13 }
  0x25   :  { %p2227_p1 = scmp.ne.s32.totalorder %s53_s13, %s2226_s5  ;;  %p2232_p3 = scmp.lt.s32.totalorder %s2226_s5, %s2226_s5 }
  0x27   :  { %p2233_p4 = por %p2232_p3, %p2231_p2 }
  0x29   :  { %p2234_p5 = pnand %p2233_p4, %p2227_p1 }
  0x2b   :  { %2237 = shalt.err (!%p2234_p5)
}
  0x2c   :  { %58 = dma.hbm_to_vmem [thread:$0]  %s2621_s3, 1024, %s53_s13, [#allocation6], %s2310_s22, %s2310_s22, %s2311_s23  }
  0x2d   :  { %s2314_s18 = smov [#allocation10]   ;;  %s2315_s20 = smov [#allocation11]  }
  0x2e   :  { %s80_s19 = sshll.u32 %s2314_s18, 4  ;;  %s94_s21 = sshll.u32 %s2315_s20, 4  ;;  %s81_s19 = int_to_ptr.vmem [resolvable:$true] %s80_s19  ;;  %s95_s21 = int_to_ptr.vmem [resolvable:$true] %s94_s21 }
  0x2f   :  { %s2246_s0 = scalar_lea.vmem %s81_s19, 1024  ;;  %p2251_p7 = scmp.lt.s32.totalorder %s81_s19, %s81_s19 }
  0x30   :  { %p2247_p6 = scmp.ne.s32.totalorder %s81_s19, %s2246_s0  ;;  %p2252_p8 = scmp.lt.s32.totalorder %s2246_s0, %s2246_s0 }
  0x32   :  { %p2253_p9 = por %p2252_p8, %p2251_p7 }
  0x34   :  { %p2254_p10 = pnand %p2253_p9, %p2247_p6 }
  0x36   :  { %2257 = shalt.err (!%p2254_p10)
}
  0x37   :  { %86 = dma.hbm_to_vmem [thread:$0]  %s2625_s7, 1024, %s81_s19, [#allocation9], %s2310_s22, %s2310_s22, %s2311_s23  }
  0x38   :  { %s2266_s3 = scalar_lea.vmem %s95_s21, 1024  ;;  %p2271_p12 = scmp.lt.s32.totalorder %s95_s21, %s95_s21 }
  0x39   :  { %p2267_p11 = scmp.ne.s32.totalorder %s95_s21, %s2266_s3  ;;  %p2272_p13 = scmp.lt.s32.totalorder %s2266_s3, %s2266_s3 }
  0x3b   :  { %p2273_p0 = por %p2272_p13, %p2271_p12 }
  0x3d   :  { %p2274_p1 = pnand %p2273_p0, %p2267_p11 }
  0x3f   :  { %2277 = shalt.err (!%p2274_p1)
}
  0x40   :  { %100 = dma.hbm_to_vmem [thread:$0]  %s2627_s9, 1024, %s95_s21, [#allocation12], %s2310_s22, %s2310_s22, %s2311_s23  }
  0x41   :  { %2298 = dma.done.wait [#allocation3], 2048  }
  0x42   :  { %2299 = vsyncadd [#allocation3], 4294965248 }
  0x43   :  { %2300 = dma.done.wait [#allocation6], 2048  }
  0x44   :  { %2301 = vsyncadd [#allocation6], 4294965248 }
  0x45   :  { %2302 = dma.done.wait [#allocation9], 2048  }
  0x46   :  { %2303 = vsyncadd [#allocation9], 4294965248 }
  0x47   :  { %2304 = dma.done.wait [#allocation12], 1024  }
  0x48   :  { %2305 = vsyncadd [#allocation12], 4294966272  ;;  %v2102_v0 = vld [vmem:[#allocation5 + $0x38] sm:$0xff]   ;;  %v2103_v1 = vld [vmem:[#allocation5 + $0x30] sm:$0xff]  }
  0x49   :  { %1835 = vmatprep.subr.bf16.mxu0 %v2102_v0  ;;  %2075 = vmatprep.subr.bf16.mxu1 %v2102_v0  ;;  %v2104_v2 = vld [vmem:[#allocation5 + $0x28] sm:$0xff]   ;;  %v2105_v3 = vld [vmem:[#allocation5 + $0x20] sm:$0xff]   ;;  %v2106_v5 = vld [vmem:[#allocation5 + $0x18] sm:$0xff]  }
  0x4a   :  { %1836 = vmatpush3.bf16.msra.mxu0 %v2102_v0  ;;  %2083 = vmatpush3.bf16.msra.mxu1 %v2102_v0  ;;  %v2110_v4 = vld [vmem:[#allocation2] sm:$0xff]   ;;  %v2107_v6 = vld [vmem:[#allocation5 + $0x10] sm:$0xff]   ;;  %v2108_v8 = vld [vmem:[#allocation5 + $0x8] sm:$0xff]  }
  0x4b   :  { %1837 = vmatprep.subr.bf16.mxu0 %v2103_v1  ;;  %2076 = vmatprep.subr.bf16.mxu1 %v2103_v1  ;;  %v2118_v7 = vld [vmem:[#allocation2 + $0x40] sm:$0xff]   ;;  %v2111_v10 = vld [vmem:[#allocation2 + $0x8] sm:$0xff]   ;;  %v2126_v12 = vld [vmem:[#allocation7 + $0x38] sm:$0xff]  }
  0x4c   :  { %1851 = vmatprep.mubr.bf16.mxu0 %v2110_v4  ;;  %1867 = vmatprep.mubr.bf16.mxu1 %v2118_v7  ;;  %v2109_v9 = vld [vmem:[#allocation5] sm:$0xff]   ;;  %v2119_v11 = vld [vmem:[#allocation2 + $0x48] sm:$0xff]   ;;  %v2112_v13 = vld [vmem:[#allocation2 + $0x10] sm:$0xff]  }
  0x4d   :  { %v2120_v14 = vld [vmem:[#allocation2 + $0x50] sm:$0xff]   ;;  %v2128_v16 = vld [vmem:[#allocation7 + $0x28] sm:$0xff]   ;;  %v2113_v17 = vld [vmem:[#allocation2 + $0x18] sm:$0xff]  }
  0x4e   :  { %1838 = vmatpush3.bf16.msra.mxu0 %v2103_v1  ;;  %2084 = vmatpush3.bf16.msra.mxu1 %v2103_v1  ;;  %v2127_v15 = vld [vmem:[#allocation7 + $0x30] sm:$0xff]   ;;  %v2121_v18 = vld [vmem:[#allocation2 + $0x58] sm:$0xff]   ;;  %v2114_v19 = vld [vmem:[#allocation2 + $0x20] sm:$0xff]  }
  0x4f   :  { %1839 = vmatprep.subr.bf16.mxu0 %v2104_v2  ;;  %2077 = vmatprep.subr.bf16.mxu1 %v2104_v2  ;;  %v2122_v20 = vld [vmem:[#allocation2 + $0x60] sm:$0xff]   ;;  %v2130_v22 = vld [vmem:[#allocation7 + $0x18] sm:$0xff]   ;;  %v2115_v23 = vld [vmem:[#allocation2 + $0x28] sm:$0xff]  }
  0x50   :  { %v2129_v21 = vld [vmem:[#allocation7 + $0x20] sm:$0xff]   ;;  %v2123_v24 = vld [vmem:[#allocation2 + $0x68] sm:$0xff]   ;;  %v2116_v25 = vld [vmem:[#allocation2 + $0x30] sm:$0xff]  }
  0x51   :  { %v2124_v26 = vld [vmem:[#allocation2 + $0x70] sm:$0xff]   ;;  %v2117_v27 = vld [vmem:[#allocation2 + $0x38] sm:$0xff]   ;;  %v2132_v30 = vld [vmem:[#allocation7 + $0x8] sm:$0xff]  }
  0x52   :  { %1840 = vmatpush3.bf16.msra.mxu0 %v2104_v2  ;;  %2085 = vmatpush3.bf16.msra.mxu1 %v2104_v2  ;;  %v2125_v28 = vld [vmem:[#allocation2 + $0x78] sm:$0xff]   ;;  %v2131_v29 = vld [vmem:[#allocation7 + $0x10] sm:$0xff]   ;;  %v2133_v31 = vld [vmem:[#allocation7] sm:$0xff]  }
  0x53   :  { %1841 = vmatprep.subr.bf16.mxu0 %v2105_v3  ;;  %2078 = vmatprep.subr.bf16.mxu1 %v2105_v3  ;;  %v2134_v32 = vld [vmem:[#allocation8 + $0x38] sm:$0xff]   ;;  %v2135_v33 = vld [vmem:[#allocation8 + $0x30] sm:$0xff]   ;;  %v2136_v34 = vld [vmem:[#allocation8 + $0x28] sm:$0xff]  }
  0x54   :  { %v2137_v35 = vld [vmem:[#allocation8 + $0x20] sm:$0xff]   ;;  %v2138_v36 = vld [vmem:[#allocation8 + $0x18] sm:$0xff]  }
  0x55   :  { %v2420_v41 = vld [vmem:[%s2620_s2] ss:$0 sm:$0xff] }
  0x56   :  { %1842 = vmatpush3.bf16.msra.mxu0 %v2105_v3  ;;  %2086 = vmatpush3.bf16.msra.mxu1 %v2105_v3 }
  0x57   :  { %1843 = vmatprep.subr.bf16.mxu0 %v2106_v5  ;;  %2079 = vmatprep.subr.bf16.mxu1 %v2106_v5 }
  0x5a   :  { %1844 = vmatpush3.bf16.msra.mxu0 %v2106_v5  ;;  %2087 = vmatpush3.bf16.msra.mxu1 %v2106_v5 }
  0x5b   :  { %1845 = vmatprep.subr.bf16.mxu0 %v2107_v6  ;;  %2080 = vmatprep.subr.bf16.mxu1 %v2107_v6 }
  0x5e   :  { %1846 = vmatpush3.bf16.msra.mxu0 %v2107_v6  ;;  %2088 = vmatpush3.bf16.msra.mxu1 %v2107_v6 }
  0x5f   :  { %1847 = vmatprep.subr.bf16.mxu0 %v2108_v8  ;;  %2081 = vmatprep.subr.bf16.mxu1 %v2108_v8 }
  0x62   :  { %1848 = vmatpush3.bf16.msra.mxu0 %v2108_v8  ;;  %2089 = vmatpush3.bf16.msra.mxu1 %v2108_v8 }
  0x63   :  { %1849 = vmatprep.subr.bf16.mxu0 %v2109_v9  ;;  %2082 = vmatprep.subr.bf16.mxu1 %v2109_v9 }
  0x66   :  { %1850 = vmatpush3.bf16.msra.mxu0 %v2109_v9  ;;  %2090 = vmatpush3.bf16.msra.mxu1 %v2109_v9 }
  0x67   :  { %1883 = vmatprep.subr.bf16.mxu1 %v2126_v12  ;;  %1931 = vmatprep.subr.bf16.mxu0 %v2134_v32 }
  0x69   :  { %1852 = vmatmul.mubr.bf16.vlgmr.msra.gmra.mxu0 %v2111_v10  ;;  %1868 = vmatmul.mubr.bf16.vlgmr.msra.gmra.mxu1 %v2119_v11 }
  0x6a   :  { %1855 = vmatprep.mubr.bf16.mxu0 %v2112_v13  ;;  %1871 = vmatprep.mubr.bf16.mxu1 %v2120_v14 }
  0x6b   :  { %1884 = vmatpush3.bf16.msra.mxu1 %v2126_v12  ;;  %1932 = vmatpush3.bf16.msra.mxu0 %v2134_v32 }
  0x6c   :  { %1885 = vmatprep.subr.bf16.mxu1 %v2127_v15  ;;  %1933 = vmatprep.subr.bf16.mxu0 %v2135_v33 }
  0x6f   :  { %1886 = vmatpush3.bf16.msra.mxu1 %v2127_v15  ;;  %1934 = vmatpush3.bf16.msra.mxu0 %v2135_v33 }
  0x70   :  { %1887 = vmatprep.subr.bf16.mxu1 %v2128_v16  ;;  %1935 = vmatprep.subr.bf16.mxu0 %v2136_v34 }
  0x71   :  { %1856 = vmatmul.mubr.bf16.gmra.mxu0 %v2113_v17  ;;  %1872 = vmatmul.mubr.bf16.gmra.mxu1 %v2121_v18 }
  0x72   :  { %1859 = vmatprep.mubr.bf16.mxu0 %v2114_v19  ;;  %1875 = vmatprep.mubr.bf16.mxu1 %v2122_v20 }
  0x73   :  { %1888 = vmatpush3.bf16.msra.mxu1 %v2128_v16  ;;  %1936 = vmatpush3.bf16.msra.mxu0 %v2136_v34 }
  0x74   :  { %1889 = vmatprep.subr.bf16.mxu1 %v2129_v21  ;;  %1937 = vmatprep.subr.bf16.mxu0 %v2137_v35 }
  0x77   :  { %1890 = vmatpush3.bf16.msra.mxu1 %v2129_v21  ;;  %1938 = vmatpush3.bf16.msra.mxu0 %v2137_v35 }
  0x78   :  { %1891 = vmatprep.subr.bf16.mxu1 %v2130_v22  ;;  %1939 = vmatprep.subr.bf16.mxu0 %v2138_v36 }
  0x79   :  { %1860 = vmatmul.mubr.bf16.gmra.mxu0 %v2115_v23  ;;  %1876 = vmatmul.mubr.bf16.gmra.mxu1 %v2123_v24 }
  0x7a   :  { %1863 = vmatprep.mubr.bf16.mxu0 %v2116_v25  ;;  %1879 = vmatprep.mubr.bf16.mxu1 %v2124_v26 }
  0x7b   :  { %1892 = vmatpush3.bf16.msra.mxu1 %v2130_v22  ;;  %1940 = vmatpush3.bf16.msra.mxu0 %v2138_v36 }
  0x7c   :  { %1893 = vmatprep.subr.bf16.mxu1 %v2131_v29 }
  0x7f   :  { %1894 = vmatpush3.bf16.msra.mxu1 %v2131_v29 }
  0x80   :  { %1895 = vmatprep.subr.bf16.mxu1 %v2132_v30 }
  0x81   :  { %1864 = vmatmul.mubr.bf16.gmra.mxu0 %v2117_v27  ;;  %1880 = vmatmul.mubr.bf16.gmra.mxu1 %v2125_v28 }
  0x83   :  { %1896 = vmatpush3.bf16.msra.mxu1 %v2132_v30 }
  0x84   :  { %1897 = vmatprep.subr.bf16.mxu1 %v2133_v31 }
  0x87   :  { %1898 = vmatpush3.bf16.msra.mxu1 %v2133_v31 }
 0x129   :  { %v1853_v37 = vpop.f32.mrf.mxu0  ;;  %v2415_v38 = vpop.f32.mrf.mxu1 }
 0x12a   :  { %v364_v46 = vadd.f32 %v1853_v37, %v2420_v41 }
 0x12b   :  { %v355_v39 = vpop.f32.mrf.mxu0  ;;  %v419_v40 = vpop.f32.mrf.mxu1 }
 0x12c   :  { %v356_v44 = vadd.f32 %v2420_v41, %v355_v39  ;;  %v484_v55 = vmax.f32 %v364_v46, 0.0  ;;  %v420_v27 = vadd.f32 %v2420_v41, %v419_v40 }
 0x12d   :  { %v1854_v42 = vpop.f32.mrf.mxu0  ;;  %v2422_v43 = vpop.f32.mrf.mxu1 }
 0x12e   :  { %v367_v45 = vadd.f32 %v1854_v42, %v2420_v41  ;;  %v482_v53 = vmax.f32 %v356_v44, 0.0  ;;  %v498_v36 = vmax.f32 %v420_v27, 0.0  ;;  %v2143_v27 = vld [vmem:[#allocation10 + $0x30] sm:$0xff]  }
 0x12f   :  { %v358_v47 = vpop.f32.mrf.mxu0  ;;  %v422_v48 = vpop.f32.mrf.mxu1 }
 0x130   :  { %v359_v49 = vadd.f32 %v2420_v41, %v358_v47  ;;  %v485_v50 = vmax.f32 %v367_v45, 0.0  ;;  %v423_v28 = vadd.f32 %v2420_v41, %v422_v48 }
 0x131   :  { %v1857_v51 = vpop.f32.mrf.mxu0  ;;  %v2428_v52 = vpop.f32.mrf.mxu1 }
 0x132   :  { %v483_v54 = vmax.f32 %v359_v49, 0.0  ;;  %v515_v59 = vpack.c.bf16 %v485_v50, %v484_v55  ;;  %v380_v0 = vadd.f32 %v1857_v51, %v2420_v41  ;;  %v499_v39 = vmax.f32 %v423_v28, 0.0  ;;  %v2145_v28 = vld [vmem:[#allocation10 + $0x20] sm:$0xff]  }
 0x133   :  { %v371_v56 = vpop.f32.mrf.mxu0  ;;  %v435_v57 = vpop.f32.mrf.mxu1  ;;  %v428_v51 = vadd.f32 %v2415_v38, %v2420_v41  ;;  %v444_v38 = vadd.f32 %v2428_v52, %v2420_v41 }
 0x134   :  { %v514_v58 = vpack.c.bf16 %v483_v54, %v482_v53  ;;  %v372_v62 = vadd.f32 %v2420_v41, %v371_v56  ;;  %v488_v8 = vmax.f32 %v380_v0, 0.0  ;;  %v522_v48 = vpack.c.bf16 %v499_v39, %v498_v36 }
 0x135   :  { %v1858_v60 = vpop.f32.mrf.mxu0  ;;  %v2430_v61 = vpop.f32.mrf.mxu1  ;;  %v436_v49 = vadd.f32 %v2420_v41, %v435_v57  ;;  %v431_v54 = vadd.f32 %v2422_v43, %v2420_v41 }
 0x136   :  { %v383_v63 = vadd.f32 %v1858_v60, %v2420_v41  ;;  %1899 = vmatprep.mubr.bf16.mxu1 %v514_v58  ;;  %v486_v6 = vmax.f32 %v372_v62, 0.0  ;;  %v447_v43 = vadd.f32 %v2430_v61, %v2420_v41 }
 0x137   :  { %v374_v1 = vpop.f32.mrf.mxu0  ;;  %1900 = vmatmul.mubr.bf16.vlgmr.msra.gmra.mxu1 %v515_v59  ;;  %v438_v5 = vpop.f32.mrf.mxu1  ;;  %v502_v56 = vmax.f32 %v436_v49, 0.0  ;;  %v500_v59 = vmax.f32 %v428_v51, 0.0  ;;  %v501_v60 = vmax.f32 %v431_v54, 0.0 }
 0x138   :  { %v375_v2 = vadd.f32 %v2420_v41, %v374_v1  ;;  %v489_v3 = vmax.f32 %v383_v63, 0.0  ;;  %v439_v50 = vadd.f32 %v2420_v41, %v438_v5  ;;  %v504_v5 = vmax.f32 %v444_v38, 0.0 }
 0x139   :  { %v1861_v4 = vpop.f32.mrf.mxu0  ;;  %v2436_v13 = vpop.f32.mrf.mxu1  ;;  %v523_v1 = vpack.c.bf16 %v501_v60, %v500_v59 }
 0x13a   :  { %v487_v7 = vmax.f32 %v375_v2, 0.0  ;;  %v517_v11 = vpack.c.bf16 %v489_v3, %v488_v8  ;;  %v396_v16 = vadd.f32 %v1861_v4, %v2420_v41  ;;  %v503_v58 = vmax.f32 %v439_v50, 0.0 }
 0x13b   :  { %v387_v9 = vpop.f32.mrf.mxu0  ;;  %v451_v21 = vpop.f32.mrf.mxu1  ;;  %v460_v52 = vadd.f32 %v2436_v13, %v2420_v41  ;;  %v2139_v13 = vld [vmem:[#allocation8 + $0x10] sm:$0xff]  }
 0x13c   :  { %v516_v10 = vpack.c.bf16 %v487_v7, %v486_v6  ;;  %v388_v14 = vadd.f32 %v2420_v41, %v387_v9  ;;  %v492_v24 = vmax.f32 %v396_v16, 0.0  ;;  %v524_v63 = vpack.c.bf16 %v503_v58, %v502_v56  ;;  %1941 = vmatprep.subr.bf16.mxu0 %v2139_v13 }
 0x13d   :  { %v1862_v12 = vpop.f32.mrf.mxu0  ;;  %v1878_v31 = vpop.f32.mrf.mxu1  ;;  %v452_v57 = vadd.f32 %v2420_v41, %v451_v21  ;;  %v505_v6 = vmax.f32 %v447_v43, 0.0  ;;  %1942 = vmatpush3.bf16.msra.mxu0 %v2139_v13 }
 0x13e   :  { %v399_v15 = vadd.f32 %v1862_v12, %v2420_v41  ;;  %1903 = vmatprep.mubr.bf16.mxu1 %v516_v10  ;;  %v490_v22 = vmax.f32 %v388_v14, 0.0  ;;  %v463_v12 = vadd.f32 %v1878_v31, %v2420_v41  ;;  %v2148_v31 = vld [vmem:[#allocation10 + $0x8] sm:$0xff]  }
 0x13f   :  { %v390_v17 = vpop.f32.mrf.mxu0  ;;  %1904 = vmatmul.mubr.bf16.gmra.mxu1 %v517_v11  ;;  %v454_v40 = vpop.f32.mrf.mxu1  ;;  %v506_v3 = vmax.f32 %v452_v57, 0.0  ;;  %v525_v11 = vpack.c.bf16 %v505_v6, %v504_v5 }
 0x140   :  { %v391_v18 = vadd.f32 %v2420_v41, %v390_v17  ;;  %v493_v19 = vmax.f32 %v399_v15, 0.0  ;;  %v455_v0 = vadd.f32 %v2420_v41, %v454_v40  ;;  %v508_v15 = vmax.f32 %v460_v52, 0.0 }
 0x141   :  { %v1865_v20 = vpop.f32.mrf.mxu0  ;;  %v1881_v55 = vpop.f32.mrf.mxu1  ;;  %v509_v16 = vmax.f32 %v463_v12, 0.0 }
 0x142   :  { %v491_v23 = vmax.f32 %v391_v18, 0.0  ;;  %v519_v29 = vpack.c.bf16 %v493_v19, %v492_v24  ;;  %v412_v34 = vadd.f32 %v1865_v20, %v2420_v41  ;;  %v507_v4 = vmax.f32 %v455_v0, 0.0  ;;  %v2140_v24 = vld [vmem:[#allocation8 + $0x8] sm:$0xff]  }
 0x143   :  { %v403_v25 = vpop.f32.mrf.mxu0  ;;  %v467_v62 = vpop.f32.mrf.mxu1  ;;  %v527_v18 = vpack.c.bf16 %v509_v16, %v508_v15  ;;  %v476_v19 = vadd.f32 %v1881_v55, %v2420_v41  ;;  %1943 = vmatprep.subr.bf16.mxu0 %v2140_v24 }
 0x144   :  { %v518_v26 = vpack.c.bf16 %v491_v23, %v490_v22  ;;  %v404_v32 = vadd.f32 %v2420_v41, %v403_v25  ;;  %v496_v46 = vmax.f32 %v412_v34, 0.0  ;;  %v526_v8 = vpack.c.bf16 %v507_v4, %v506_v3  ;;  %1944 = vmatpush3.bf16.msra.mxu0 %v2140_v24  ;;  %v2141_v25 = vld [vmem:[#allocation8] sm:$0xff]  }
 0x145   :  { %v1866_v30 = vpop.f32.mrf.mxu0  ;;  %v1882_v2 = vpop.f32.mrf.mxu1  ;;  %v468_v9 = vadd.f32 %v2420_v41, %v467_v62  ;;  %v512_v21 = vmax.f32 %v476_v19, 0.0  ;;  %1945 = vmatprep.subr.bf16.mxu0 %v2141_v25  ;;  %v2470_v34 = vld [vmem:[%s2622_s4] ss:$0 sm:$0xff] }
 0x146   :  { %v415_v33 = vadd.f32 %v1866_v30, %v2420_v41  ;;  %1907 = vmatprep.mubr.bf16.mxu1 %v518_v26  ;;  %v494_v44 = vmax.f32 %v404_v32, 0.0  ;;  %v479_v20 = vadd.f32 %v1882_v2, %v2420_v41  ;;  %v2142_v26 = vld [vmem:[#allocation10 + $0x38] sm:$0xff]   ;;  %v2147_v30 = vld [vmem:[#allocation10 + $0x10] sm:$0xff]  }
 0x147   :  { %v406_v35 = vpop.f32.mrf.mxu0  ;;  %1908 = vmatmul.mubr.bf16.gmra.mxu1 %v519_v29  ;;  %v470_v7 = vpop.f32.mrf.mxu1  ;;  %v510_v61 = vmax.f32 %v468_v9, 0.0  ;;  %1979 = vmatprep.subr.bf16.mxu1 %v2142_v26  ;;  %v2146_v29 = vld [vmem:[#allocation10 + $0x18] sm:$0xff]  }
 0x148   :  { %v407_v37 = vadd.f32 %v2420_v41, %v406_v35  ;;  %v497_v42 = vmax.f32 %v415_v33, 0.0  ;;  %v471_v10 = vadd.f32 %v2420_v41, %v470_v7  ;;  %v513_v22 = vmax.f32 %v479_v20, 0.0  ;;  %1946 = vmatpush3.bf16.msra.mxu0 %v2141_v25  ;;  %1980 = vmatpush3.bf16.msra.mxu1 %v2142_v26  ;;  %v2144_v41 = vld [vmem:[#allocation10 + $0x28] sm:$0xff]  }
 0x149   :  { %1981 = vmatprep.subr.bf16.mxu1 %v2143_v27 }
 0x14a   :  { %v495_v45 = vmax.f32 %v407_v37, 0.0  ;;  %v521_v53 = vpack.c.bf16 %v497_v42, %v496_v46  ;;  %v511_v14 = vmax.f32 %v471_v10, 0.0  ;;  %v529_v23 = vpack.c.bf16 %v513_v22, %v512_v21 }
 0x14c   :  { %v520_v47 = vpack.c.bf16 %v495_v45, %v494_v44  ;;  %v528_v17 = vpack.c.bf16 %v511_v14, %v510_v61  ;;  %1982 = vmatpush3.bf16.msra.mxu1 %v2143_v27 }
 0x14d   :  { %1983 = vmatprep.subr.bf16.mxu1 %v2144_v41 }
 0x14e   :  { %1911 = vmatprep.mubr.bf16.mxu1 %v520_v47 }
 0x14f   :  { %1912 = vmatmul.mubr.bf16.gmra.mxu1 %v521_v53 }
 0x150   :  { %1915 = vmatprep.mubr.bf16.mxu1 %v522_v48  ;;  %1984 = vmatpush3.bf16.msra.mxu1 %v2144_v41 }
 0x151   :  { %1985 = vmatprep.subr.bf16.mxu1 %v2145_v28 }
 0x154   :  { %1986 = vmatpush3.bf16.msra.mxu1 %v2145_v28 }
 0x155   :  { %1987 = vmatprep.subr.bf16.mxu1 %v2146_v29 }
 0x157   :  { %1916 = vmatmul.mubr.bf16.gmra.mxu1 %v523_v1 }
 0x158   :  { %1919 = vmatprep.mubr.bf16.mxu1 %v524_v63  ;;  %1988 = vmatpush3.bf16.msra.mxu1 %v2146_v29 }
 0x159   :  { %1989 = vmatprep.subr.bf16.mxu1 %v2147_v30 }
 0x15c   :  { %1990 = vmatpush3.bf16.msra.mxu1 %v2147_v30 }
 0x15d   :  { %1991 = vmatprep.subr.bf16.mxu1 %v2148_v31 }
 0x15f   :  { %1920 = vmatmul.mubr.bf16.gmra.mxu1 %v525_v11 }
 0x160   :  { %1923 = vmatprep.mubr.bf16.mxu1 %v526_v8  ;;  %1992 = vmatpush3.bf16.msra.mxu1 %v2148_v31 }
 0x167   :  { %1924 = vmatmul.mubr.bf16.gmra.mxu1 %v527_v18 }
 0x168   :  { %1927 = vmatprep.mubr.bf16.mxu1 %v528_v17 }
 0x16f   :  { %1928 = vmatmul.mubr.bf16.gmra.mxu1 %v529_v23 }
 0x1f7   :  { %v1901_v32 = vpop.f32.mrf.mxu1 }
 0x1f8   :  { %v644_v39 = vadd.f32 %v1901_v32, %v2470_v34 }
 0x1f9   :  { %v635_v33 = vpop.f32.mrf.mxu1 }
 0x1fa   :  { %v636_v36 = vadd.f32 %v2470_v34, %v635_v33  ;;  %v764_v48 = vmax.f32 %v644_v39, 0.0 }
 0x1fb   :  { %v1902_v35 = vpop.f32.mrf.mxu1 }
 0x1fc   :  { %v647_v37 = vadd.f32 %v1902_v35, %v2470_v34  ;;  %v762_v46 = vmax.f32 %v636_v36, 0.0 }
 0x1fd   :  { %v638_v42 = vpop.f32.mrf.mxu1 }
 0x1fe   :  { %v639_v40 = vadd.f32 %v2470_v34, %v638_v42  ;;  %v765_v44 = vmax.f32 %v647_v37, 0.0 }
 0x1ff   :  { %v1905_v45 = vpop.f32.mrf.mxu1 }
 0x200   :  { %v763_v47 = vmax.f32 %v639_v40, 0.0  ;;  %v795_v51 = vpack.c.bf16 %v765_v44, %v764_v48  ;;  %v660_v56 = vadd.f32 %v1905_v45, %v2470_v34 }
 0x201   :  { %v651_v49 = vpop.f32.mrf.mxu1 }
 0x202   :  { %v794_v50 = vpack.c.bf16 %v763_v47, %v762_v46  ;;  %v652_v54 = vadd.f32 %v2470_v34, %v651_v49  ;;  %v768_v0 = vmax.f32 %v660_v56, 0.0 }
 0x203   :  { %v1906_v53 = vpop.f32.mrf.mxu1 }
 0x204   :  { %v663_v55 = vadd.f32 %v1906_v53, %v2470_v34  ;;  %1947 = vmatprep.mubr.bf16.mxu0 %v794_v50  ;;  %v766_v63 = vmax.f32 %v652_v54, 0.0 }
 0x205   :  { %v654_v58 = vpop.f32.mrf.mxu1  ;;  %1948 = vmatmul.mubr.bf16.vlgmr.msra.gmra.mxu0 %v795_v51 }
 0x206   :  { %v655_v59 = vadd.f32 %v2470_v34, %v654_v58  ;;  %v769_v60 = vmax.f32 %v663_v55, 0.0 }
 0x207   :  { %v1909_v62 = vpop.f32.mrf.mxu1 }
 0x208   :  { %v767_v57 = vmax.f32 %v655_v59, 0.0  ;;  %v797_v43 = vpack.c.bf16 %v769_v60, %v768_v0  ;;  %v676_v5 = vadd.f32 %v1909_v62, %v2470_v34 }
 0x209   :  { %v667_v1 = vpop.f32.mrf.mxu1 }
 0x20a   :  { %v796_v38 = vpack.c.bf16 %v767_v57, %v766_v63  ;;  %v668_v3 = vadd.f32 %v2470_v34, %v667_v1  ;;  %v772_v52 = vmax.f32 %v676_v5, 0.0 }
 0x20b   :  { %v1910_v2 = vpop.f32.mrf.mxu1 }
 0x20c   :  { %v679_v4 = vadd.f32 %v1910_v2, %v2470_v34  ;;  %1951 = vmatprep.mubr.bf16.mxu0 %v796_v38  ;;  %v770_v10 = vmax.f32 %v668_v3, 0.0 }
 0x20d   :  { %v670_v6 = vpop.f32.mrf.mxu1  ;;  %1952 = vmatmul.mubr.bf16.gmra.mxu0 %v797_v43 }
 0x20e   :  { %v671_v7 = vadd.f32 %v2470_v34, %v670_v6  ;;  %v773_v8 = vmax.f32 %v679_v4, 0.0 }
 0x20f   :  { %v1913_v9 = vpop.f32.mrf.mxu1 }
 0x210   :  { %v771_v11 = vmax.f32 %v671_v7, 0.0  ;;  %v799_v14 = vpack.c.bf16 %v773_v8, %v772_v52  ;;  %v692_v18 = vadd.f32 %v1913_v9, %v2470_v34 }
 0x211   :  { %v683_v12 = vpop.f32.mrf.mxu1 }
 0x212   :  { %v798_v61 = vpack.c.bf16 %v771_v11, %v770_v10  ;;  %v684_v16 = vadd.f32 %v2470_v34, %v683_v12  ;;  %v776_v24 = vmax.f32 %v692_v18, 0.0 }
 0x213   :  { %v1914_v15 = vpop.f32.mrf.mxu1 }
 0x214   :  { %v695_v17 = vadd.f32 %v1914_v15, %v2470_v34  ;;  %1955 = vmatprep.mubr.bf16.mxu0 %v798_v61  ;;  %v774_v23 = vmax.f32 %v684_v16, 0.0 }
 0x215   :  { %v686_v19 = vpop.f32.mrf.mxu1  ;;  %1956 = vmatmul.mubr.bf16.gmra.mxu0 %v799_v14 }
 0x216   :  { %v687_v20 = vadd.f32 %v2470_v34, %v686_v19  ;;  %v777_v21 = vmax.f32 %v695_v17, 0.0 }
 0x217   :  { %v1917_v22 = vpop.f32.mrf.mxu1 }
 0x218   :  { %v775_v13 = vmax.f32 %v687_v20, 0.0  ;;  %v801_v27 = vpack.c.bf16 %v777_v21, %v776_v24  ;;  %v708_v30 = vadd.f32 %v1917_v22, %v2470_v34  ;;  %v2149_v20 = vld [vmem:[#allocation10] sm:$0xff]   ;;  %v2150_v21 = vld [vmem:[#allocation11 + $0x38] sm:$0xff]   ;;  %v2151_v22 = vld [vmem:[#allocation11 + $0x30] sm:$0xff]  }
 0x219   :  { %v699_v25 = vpop.f32.mrf.mxu1  ;;  %1993 = vmatprep.subr.bf16.mxu1 %v2149_v20  ;;  %2027 = vmatprep.subr.bf16.mxu0 %v2150_v21  ;;  %v2155_v24 = vld [vmem:[#allocation11 + $0x10] sm:$0xff]  }
 0x21a   :  { %v800_v26 = vpack.c.bf16 %v775_v13, %v774_v23  ;;  %v700_v28 = vadd.f32 %v2470_v34, %v699_v25  ;;  %v780_v39 = vmax.f32 %v708_v30, 0.0  ;;  %1994 = vmatpush3.bf16.msra.mxu1 %v2149_v20  ;;  %2028 = vmatpush3.bf16.msra.mxu0 %v2150_v21  ;;  %v2152_v23 = vld [vmem:[#allocation11 + $0x28] sm:$0xff]   ;;  %v2154_v13 = vld [vmem:[#allocation11 + $0x18] sm:$0xff]  }
 0x21b   :  { %v1918_v41 = vpop.f32.mrf.mxu1  ;;  %2029 = vmatprep.subr.bf16.mxu0 %v2151_v22  ;;  %v2156_v25 = vld [vmem:[#allocation11 + $0x8] sm:$0xff]  }
 0x21c   :  { %v711_v29 = vadd.f32 %v1918_v41, %v2470_v34  ;;  %1959 = vmatprep.mubr.bf16.mxu0 %v800_v26  ;;  %v778_v36 = vmax.f32 %v700_v28, 0.0  ;;  %v2507_v41 = vld [vmem:[%s2624_s6] ss:$0 sm:$0xff] }
 0x21d   :  { %v702_v31 = vpop.f32.mrf.mxu1  ;;  %1960 = vmatmul.mubr.bf16.gmra.mxu0 %v801_v27 }
 0x21e   :  { %v703_v32 = vadd.f32 %v2470_v34, %v702_v31  ;;  %v781_v33 = vmax.f32 %v711_v29, 0.0  ;;  %2030 = vmatpush3.bf16.msra.mxu0 %v2151_v22 }
 0x21f   :  { %v1921_v35 = vpop.f32.mrf.mxu1  ;;  %2031 = vmatprep.subr.bf16.mxu0 %v2152_v23 }
 0x220   :  { %v779_v37 = vmax.f32 %v703_v32, 0.0  ;;  %v803_v44 = vpack.c.bf16 %v781_v33, %v780_v39  ;;  %v724_v48 = vadd.f32 %v1921_v35, %v2470_v34 }
 0x221   :  { %v715_v42 = vpop.f32.mrf.mxu1 }
 0x222   :  { %v802_v40 = vpack.c.bf16 %v779_v37, %v778_v36  ;;  %v716_v46 = vadd.f32 %v2470_v34, %v715_v42  ;;  %v784_v56 = vmax.f32 %v724_v48, 0.0  ;;  %2032 = vmatpush3.bf16.msra.mxu0 %v2152_v23 }
 0x223   :  { %v1922_v45 = vpop.f32.mrf.mxu1 }
 0x224   :  { %v727_v47 = vadd.f32 %v1922_v45, %v2470_v34  ;;  %1963 = vmatprep.mubr.bf16.mxu0 %v802_v40  ;;  %v782_v54 = vmax.f32 %v716_v46, 0.0 }
 0x225   :  { %v718_v49 = vpop.f32.mrf.mxu1  ;;  %1964 = vmatmul.mubr.bf16.gmra.mxu0 %v803_v44 }
 0x226   :  { %v719_v50 = vadd.f32 %v2470_v34, %v718_v49  ;;  %v785_v51 = vmax.f32 %v727_v47, 0.0 }
 0x227   :  { %v1925_v53 = vpop.f32.mrf.mxu1 }
 0x228   :  { %v783_v55 = vmax.f32 %v719_v50, 0.0  ;;  %v805_v60 = vpack.c.bf16 %v785_v51, %v784_v56  ;;  %v740_v0 = vadd.f32 %v1925_v53, %v2470_v34 }
 0x229   :  { %v731_v58 = vpop.f32.mrf.mxu1 }
 0x22a   :  { %v804_v59 = vpack.c.bf16 %v783_v55, %v782_v54  ;;  %v732_v63 = vadd.f32 %v2470_v34, %v731_v58  ;;  %v788_v5 = vmax.f32 %v740_v0, 0.0 }
 0x22b   :  { %v1926_v62 = vpop.f32.mrf.mxu1 }
 0x22c   :  { %v743_v57 = vadd.f32 %v1926_v62, %v2470_v34  ;;  %1967 = vmatprep.mubr.bf16.mxu0 %v804_v59  ;;  %v786_v3 = vmax.f32 %v732_v63, 0.0 }
 0x22d   :  { %v734_v1 = vpop.f32.mrf.mxu1  ;;  %1968 = vmatmul.mubr.bf16.gmra.mxu0 %v805_v60 }
 0x22e   :  { %v735_v38 = vadd.f32 %v2470_v34, %v734_v1  ;;  %v789_v43 = vmax.f32 %v743_v57, 0.0 }
 0x22f   :  { %v1929_v2 = vpop.f32.mrf.mxu1 }
 0x230   :  { %v787_v4 = vmax.f32 %v735_v38, 0.0  ;;  %v807_v8 = vpack.c.bf16 %v789_v43, %v788_v5  ;;  %v756_v52 = vadd.f32 %v1929_v2, %v2470_v34 }
 0x231   :  { %v747_v6 = vpop.f32.mrf.mxu1 }
 0x232   :  { %v806_v7 = vpack.c.bf16 %v787_v4, %v786_v3  ;;  %v748_v10 = vadd.f32 %v2470_v34, %v747_v6  ;;  %v792_v17 = vmax.f32 %v756_v52, 0.0 }
 0x233   :  { %v1930_v9 = vpop.f32.mrf.mxu1 }
 0x234   :  { %v759_v11 = vadd.f32 %v1930_v9, %v2470_v34  ;;  %1971 = vmatprep.mubr.bf16.mxu0 %v806_v7  ;;  %v790_v15 = vmax.f32 %v748_v10, 0.0 }
 0x235   :  { %v750_v12 = vpop.f32.mrf.mxu1  ;;  %1972 = vmatmul.mubr.bf16.gmra.mxu0 %v807_v8 }
 0x236   :  { %v751_v61 = vadd.f32 %v2470_v34, %v750_v12  ;;  %v793_v14 = vmax.f32 %v759_v11, 0.0  ;;  %v2153_v34 = vld [vmem:[#allocation11 + $0x20] sm:$0xff]  }
 0x237   :  { %2033 = vmatprep.subr.bf16.mxu0 %v2153_v34 }
 0x238   :  { %v791_v16 = vmax.f32 %v751_v61, 0.0  ;;  %v809_v19 = vpack.c.bf16 %v793_v14, %v792_v17  ;;  %2034 = vmatpush3.bf16.msra.mxu0 %v2153_v34 }
 0x239   :  { %2035 = vmatprep.subr.bf16.mxu0 %v2154_v13 }
 0x23a   :  { %v808_v18 = vpack.c.bf16 %v791_v16, %v790_v15 }
 0x23c   :  { %1975 = vmatprep.mubr.bf16.mxu0 %v808_v18  ;;  %2036 = vmatpush3.bf16.msra.mxu0 %v2154_v13 }
 0x23d   :  { %1976 = vmatmul.mubr.bf16.gmra.mxu0 %v809_v19  ;;  %2037 = vmatprep.subr.bf16.mxu0 %v2155_v24 }
 0x240   :  { %2038 = vmatpush3.bf16.msra.mxu0 %v2155_v24 }
 0x241   :  { %2039 = vmatprep.subr.bf16.mxu0 %v2156_v25 }
 0x244   :  { %2040 = vmatpush3.bf16.msra.mxu0 %v2156_v25 }
 0x2c5   :  { %v1949_v26 = vpop.f32.mrf.mxu0 }
 0x2c6   :  { %v924_v31 = vadd.f32 %v1949_v26, %v2507_v41 }
 0x2c7   :  { %v915_v27 = vpop.f32.mrf.mxu0 }
 0x2c8   :  { %v916_v29 = vadd.f32 %v2507_v41, %v915_v27  ;;  %v1044_v42 = vmax.f32 %v924_v31, 0.0 }
 0x2c9   :  { %v1950_v28 = vpop.f32.mrf.mxu0 }
 0x2ca   :  { %v927_v30 = vadd.f32 %v1950_v28, %v2507_v41  ;;  %v1042_v37 = vmax.f32 %v916_v29, 0.0 }
 0x2cb   :  { %v918_v32 = vpop.f32.mrf.mxu0 }
 0x2cc   :  { %v919_v33 = vadd.f32 %v2507_v41, %v918_v32  ;;  %v1045_v35 = vmax.f32 %v927_v30, 0.0 }
 0x2cd   :  { %v1953_v36 = vpop.f32.mrf.mxu0 }
 0x2ce   :  { %v1043_v39 = vmax.f32 %v919_v33, 0.0  ;;  %v1075_v45 = vpack.c.bf16 %v1045_v35, %v1044_v42  ;;  %v940_v49 = vadd.f32 %v1953_v36, %v2507_v41 }
 0x2cf   :  { %v931_v40 = vpop.f32.mrf.mxu0 }
 0x2d0   :  { %v1074_v44 = vpack.c.bf16 %v1043_v39, %v1042_v37  ;;  %v932_v47 = vadd.f32 %v2507_v41, %v931_v40  ;;  %v1048_v58 = vmax.f32 %v940_v49, 0.0 }
 0x2d1   :  { %v1954_v46 = vpop.f32.mrf.mxu0 }
 0x2d2   :  { %v943_v48 = vadd.f32 %v1954_v46, %v2507_v41  ;;  %1995 = vmatprep.mubr.bf16.mxu1 %v1074_v44  ;;  %v1046_v55 = vmax.f32 %v932_v47, 0.0 }
 0x2d3   :  { %v934_v50 = vpop.f32.mrf.mxu0  ;;  %1996 = vmatmul.mubr.bf16.vlgmr.msra.gmra.mxu1 %v1075_v45 }
 0x2d4   :  { %v935_v51 = vadd.f32 %v2507_v41, %v934_v50  ;;  %v1049_v53 = vmax.f32 %v943_v48, 0.0 }
 0x2d5   :  { %v1957_v54 = vpop.f32.mrf.mxu0 }
 0x2d6   :  { %v1047_v56 = vmax.f32 %v935_v51, 0.0  ;;  %v1077_v62 = vpack.c.bf16 %v1049_v53, %v1048_v58  ;;  %v956_v1 = vadd.f32 %v1957_v54, %v2507_v41 }
 0x2d7   :  { %v947_v59 = vpop.f32.mrf.mxu0 }
 0x2d8   :  { %v1076_v60 = vpack.c.bf16 %v1047_v56, %v1046_v55  ;;  %v948_v57 = vadd.f32 %v2507_v41, %v947_v59  ;;  %v1052_v6 = vmax.f32 %v956_v1, 0.0 }
 0x2d9   :  { %v1958_v63 = vpop.f32.mrf.mxu0 }
 0x2da   :  { %v959_v0 = vadd.f32 %v1958_v63, %v2507_v41  ;;  %1999 = vmatprep.mubr.bf16.mxu1 %v1076_v60  ;;  %v1050_v4 = vmax.f32 %v948_v57, 0.0 }
 0x2db   :  { %v950_v38 = vpop.f32.mrf.mxu0  ;;  %2000 = vmatmul.mubr.bf16.gmra.mxu1 %v1077_v62 }
 0x2dc   :  { %v951_v43 = vadd.f32 %v2507_v41, %v950_v38  ;;  %v1053_v2 = vmax.f32 %v959_v0, 0.0 }
 0x2dd   :  { %v1961_v3 = vpop.f32.mrf.mxu0 }
 0x2de   :  { %v1051_v5 = vmax.f32 %v951_v43, 0.0  ;;  %v1079_v9 = vpack.c.bf16 %v1053_v2, %v1052_v6  ;;  %v972_v12 = vadd.f32 %v1961_v3, %v2507_v41 }
 0x2df   :  { %v963_v7 = vpop.f32.mrf.mxu0 }
 0x2e0   :  { %v1078_v8 = vpack.c.bf16 %v1051_v5, %v1050_v4  ;;  %v964_v11 = vadd.f32 %v2507_v41, %v963_v7  ;;  %v1056_v19 = vmax.f32 %v972_v12, 0.0 }
 0x2e1   :  { %v1962_v10 = vpop.f32.mrf.mxu0 }
 0x2e2   :  { %v975_v52 = vadd.f32 %v1962_v10, %v2507_v41  ;;  %2003 = vmatprep.mubr.bf16.mxu1 %v1078_v8  ;;  %v1054_v17 = vmax.f32 %v964_v11, 0.0 }
 0x2e3   :  { %v966_v61 = vpop.f32.mrf.mxu0  ;;  %2004 = vmatmul.mubr.bf16.gmra.mxu1 %v1079_v9 }
 0x2e4   :  { %v967_v14 = vadd.f32 %v2507_v41, %v966_v61  ;;  %v1057_v15 = vmax.f32 %v975_v52, 0.0 }
 0x2e5   :  { %v1965_v16 = vpop.f32.mrf.mxu0 }
 0x2e6   :  { %v1055_v18 = vmax.f32 %v967_v14, 0.0  ;;  %v1081_v22 = vpack.c.bf16 %v1057_v15, %v1056_v19  ;;  %v988_v24 = vadd.f32 %v1965_v16, %v2507_v41  ;;  %v2157_v14 = vld [vmem:[#allocation11] sm:$0xff]  }
 0x2e7   :  { %v979_v20 = vpop.f32.mrf.mxu0  ;;  %2041 = vmatprep.subr.bf16.mxu0 %v2157_v14 }
 0x2e8   :  { %v1080_v21 = vpack.c.bf16 %v1055_v18, %v1054_v17  ;;  %v980_v34 = vadd.f32 %v2507_v41, %v979_v20  ;;  %v1060_v31 = vmax.f32 %v988_v24, 0.0  ;;  %2042 = vmatpush3.bf16.msra.mxu0 %v2157_v14  ;;  %v2544_v17 = vld [vmem:[%s2626_s8] ss:$0 sm:$0xff] }
 0x2e9   :  { %v1966_v23 = vpop.f32.mrf.mxu0 }
 0x2ea   :  { %v991_v13 = vadd.f32 %v1966_v23, %v2507_v41  ;;  %2007 = vmatprep.mubr.bf16.mxu1 %v1080_v21  ;;  %v1058_v29 = vmax.f32 %v980_v34, 0.0 }
 0x2eb   :  { %v982_v25 = vpop.f32.mrf.mxu0  ;;  %2008 = vmatmul.mubr.bf16.gmra.mxu1 %v1081_v22 }
 0x2ec   :  { %v983_v26 = vadd.f32 %v2507_v41, %v982_v25  ;;  %v1061_v27 = vmax.f32 %v991_v13, 0.0 }
 0x2ed   :  { %v1969_v28 = vpop.f32.mrf.mxu0 }
 0x2ee   :  { %v1059_v30 = vmax.f32 %v983_v26, 0.0  ;;  %v1083_v35 = vpack.c.bf16 %v1061_v27, %v1060_v31  ;;  %v1004_v42 = vadd.f32 %v1969_v28, %v2507_v41 }
 0x2ef   :  { %v995_v32 = vpop.f32.mrf.mxu0 }
 0x2f0   :  { %v1082_v33 = vpack.c.bf16 %v1059_v30, %v1058_v29  ;;  %v996_v37 = vadd.f32 %v2507_v41, %v995_v32  ;;  %v1064_v49 = vmax.f32 %v1004_v42, 0.0 }
 0x2f1   :  { %v1970_v36 = vpop.f32.mrf.mxu0 }
 0x2f2   :  { %v1007_v39 = vadd.f32 %v1970_v36, %v2507_v41  ;;  %2011 = vmatprep.mubr.bf16.mxu1 %v1082_v33  ;;  %v1062_v47 = vmax.f32 %v996_v37, 0.0 }
 0x2f3   :  { %v998_v40 = vpop.f32.mrf.mxu0  ;;  %2012 = vmatmul.mubr.bf16.gmra.mxu1 %v1083_v35 }
 0x2f4   :  { %v999_v44 = vadd.f32 %v2507_v41, %v998_v40  ;;  %v1065_v45 = vmax.f32 %v1007_v39, 0.0 }
 0x2f5   :  { %v1973_v46 = vpop.f32.mrf.mxu0 }
 0x2f6   :  { %v1063_v48 = vmax.f32 %v999_v44, 0.0  ;;  %v1085_v53 = vpack.c.bf16 %v1065_v45, %v1064_v49  ;;  %v1020_v58 = vadd.f32 %v1973_v46, %v2507_v41 }
 0x2f7   :  { %v1011_v50 = vpop.f32.mrf.mxu0 }
 0x2f8   :  { %v1084_v51 = vpack.c.bf16 %v1063_v48, %v1062_v47  ;;  %v1012_v55 = vadd.f32 %v2507_v41, %v1011_v50  ;;  %v1068_v1 = vmax.f32 %v1020_v58, 0.0 }
 0x2f9   :  { %v1974_v54 = vpop.f32.mrf.mxu0 }
 0x2fa   :  { %v1023_v56 = vadd.f32 %v1974_v54, %v2507_v41  ;;  %2015 = vmatprep.mubr.bf16.mxu1 %v1084_v51  ;;  %v1066_v57 = vmax.f32 %v1012_v55, 0.0 }
 0x2fb   :  { %v1014_v59 = vpop.f32.mrf.mxu0  ;;  %2016 = vmatmul.mubr.bf16.gmra.mxu1 %v1085_v53 }
 0x2fc   :  { %v1015_v60 = vadd.f32 %v2507_v41, %v1014_v59  ;;  %v1069_v62 = vmax.f32 %v1023_v56, 0.0 }
 0x2fd   :  { %v1977_v63 = vpop.f32.mrf.mxu0 }
 0x2fe   :  { %v1067_v0 = vmax.f32 %v1015_v60, 0.0  ;;  %v1087_v2 = vpack.c.bf16 %v1069_v62, %v1068_v1  ;;  %v1036_v6 = vadd.f32 %v1977_v63, %v2507_v41 }
 0x2ff   :  { %v1027_v38 = vpop.f32.mrf.mxu0 }
 0x300   :  { %v1086_v43 = vpack.c.bf16 %v1067_v0, %v1066_v57  ;;  %v1028_v4 = vadd.f32 %v2507_v41, %v1027_v38  ;;  %v1072_v52 = vmax.f32 %v1036_v6, 0.0 }
 0x301   :  { %v1978_v3 = vpop.f32.mrf.mxu0 }
 0x302   :  { %v1039_v5 = vadd.f32 %v1978_v3, %v2507_v41  ;;  %2019 = vmatprep.mubr.bf16.mxu1 %v1086_v43  ;;  %v1070_v10 = vmax.f32 %v1028_v4, 0.0 }
 0x303   :  { %v1030_v7 = vpop.f32.mrf.mxu0  ;;  %2020 = vmatmul.mubr.bf16.gmra.mxu1 %v1087_v2 }
 0x304   :  { %v1031_v8 = vadd.f32 %v2507_v41, %v1030_v7  ;;  %v1073_v9 = vmax.f32 %v1039_v5, 0.0 }
 0x306   :  { %v1071_v11 = vmax.f32 %v1031_v8, 0.0  ;;  %v1089_v61 = vpack.c.bf16 %v1073_v9, %v1072_v52 }
 0x308   :  { %v1088_v12 = vpack.c.bf16 %v1071_v11, %v1070_v10 }
 0x30a   :  { %2023 = vmatprep.mubr.bf16.mxu1 %v1088_v12 }
 0x30b   :  { %2024 = vmatmul.mubr.bf16.gmra.mxu1 %v1089_v61 }
 0x393   :  { %v1997_v15 = vpop.f32.mrf.mxu1 }
 0x394   :  { %v1204_v20 = vadd.f32 %v1997_v15, %v2544_v17 }
 0x395   :  { %v1195_v16 = vpop.f32.mrf.mxu1 }
 0x396   :  { %v1196_v41 = vadd.f32 %v2544_v17, %v1195_v16  ;;  %v1324_v25 = vmax.f32 %v1204_v20, 0.0 }
 0x397   :  { %v1998_v18 = vpop.f32.mrf.mxu1 }
 0x398   :  { %v1207_v19 = vadd.f32 %v1998_v18, %v2544_v17  ;;  %v1322_v13 = vmax.f32 %v1196_v41, 0.0 }
 0x399   :  { %v1198_v21 = vpop.f32.mrf.mxu1 }
 0x39a   :  { %v1199_v22 = vadd.f32 %v2544_v17, %v1198_v21  ;;  %v1325_v23 = vmax.f32 %v1207_v19, 0.0 }
 0x39b   :  { %v2001_v34 = vpop.f32.mrf.mxu1 }
 0x39c   :  { %v1323_v24 = vmax.f32 %v1199_v22, 0.0  ;;  %v1355_v28 = vpack.c.bf16 %v1325_v23, %v1324_v25  ;;  %v1220_v32 = vadd.f32 %v2001_v34, %v2544_v17 }
 0x39d   :  { %v1211_v26 = vpop.f32.mrf.mxu1 }
 0x39e   :  { %v1354_v27 = vpack.c.bf16 %v1323_v24, %v1322_v13  ;;  %v1212_v30 = vadd.f32 %v2544_v17, %v1211_v26  ;;  %v1328_v40 = vmax.f32 %v1220_v32, 0.0 }
 0x39f   :  { %v2002_v29 = vpop.f32.mrf.mxu1 }
 0x3a0   :  { %v1223_v31 = vadd.f32 %v2002_v29, %v2544_v17  ;;  %2043 = vmatprep.mubr.bf16.mxu0 %v1354_v27  ;;  %v1326_v39 = vmax.f32 %v1212_v30, 0.0 }
 0x3a1   :  { %v1214_v33 = vpop.f32.mrf.mxu1  ;;  %2044 = vmatmul.mubr.bf16.vlgmr.msra.gmra.mxu0 %v1355_v28 }
 0x3a2   :  { %v1215_v35 = vadd.f32 %v2544_v17, %v1214_v33  ;;  %v1329_v36 = vmax.f32 %v1223_v31, 0.0 }
 0x3a3   :  { %v2005_v37 = vpop.f32.mrf.mxu1 }
 0x3a4   :  { %v1327_v42 = vmax.f32 %v1215_v35, 0.0  ;;  %v1357_v46 = vpack.c.bf16 %v1329_v36, %v1328_v40  ;;  %v1236_v50 = vadd.f32 %v2005_v37, %v2544_v17 }
 0x3a5   :  { %v1227_v44 = vpop.f32.mrf.mxu1 }
 0x3a6   :  { %v1356_v45 = vpack.c.bf16 %v1327_v42, %v1326_v39  ;;  %v1228_v48 = vadd.f32 %v2544_v17, %v1227_v44  ;;  %v1332_v59 = vmax.f32 %v1236_v50, 0.0 }
 0x3a7   :  { %v2006_v47 = vpop.f32.mrf.mxu1 }
 0x3a8   :  { %v1239_v49 = vadd.f32 %v2006_v47, %v2544_v17  ;;  %2047 = vmatprep.mubr.bf16.mxu0 %v1356_v45  ;;  %v1330_v56 = vmax.f32 %v1228_v48, 0.0 }
 0x3a9   :  { %v1230_v51 = vpop.f32.mrf.mxu1  ;;  %2048 = vmatmul.mubr.bf16.gmra.mxu0 %v1357_v46 }
 0x3aa   :  { %v1231_v53 = vadd.f32 %v2544_v17, %v1230_v51  ;;  %v1333_v54 = vmax.f32 %v1239_v49, 0.0 }
 0x3ab   :  { %v2009_v55 = vpop.f32.mrf.mxu1 }
 0x3ac   :  { %v1331_v58 = vmax.f32 %v1231_v53, 0.0  ;;  %v1359_v63 = vpack.c.bf16 %v1333_v54, %v1332_v59  ;;  %v1252_v38 = vadd.f32 %v2009_v55, %v2544_v17 }
 0x3ad   :  { %v1243_v60 = vpop.f32.mrf.mxu1 }
 0x3ae   :  { %v1358_v62 = vpack.c.bf16 %v1331_v58, %v1330_v56  ;;  %v1244_v0 = vadd.f32 %v2544_v17, %v1243_v60  ;;  %v1336_v7 = vmax.f32 %v1252_v38, 0.0 }
 0x3af   :  { %v2010_v57 = vpop.f32.mrf.mxu1 }
 0x3b0   :  { %v1255_v1 = vadd.f32 %v2010_v57, %v2544_v17  ;;  %2051 = vmatprep.mubr.bf16.mxu0 %v1358_v62  ;;  %v1334_v5 = vmax.f32 %v1244_v0, 0.0 }
 0x3b1   :  { %v1246_v43 = vpop.f32.mrf.mxu1  ;;  %2052 = vmatmul.mubr.bf16.gmra.mxu0 %v1359_v63 }
 0x3b2   :  { %v1247_v2 = vadd.f32 %v2544_v17, %v1246_v43  ;;  %v1337_v3 = vmax.f32 %v1255_v1, 0.0 }
 0x3b3   :  { %v2013_v4 = vpop.f32.mrf.mxu1 }
 0x3b4   :  { %v1335_v6 = vmax.f32 %v1247_v2, 0.0  ;;  %v1361_v10 = vpack.c.bf16 %v1337_v3, %v1336_v7  ;;  %v1268_v61 = vadd.f32 %v2013_v4, %v2544_v17  ;;  %v2581_v2 = vld [vmem:[%s2628_s10] ss:$0 sm:$0xff]  ;;  %s2316_s10 = smov [#allocation13]  }
 0x3b5   :  { %v1259_v8 = vpop.f32.mrf.mxu1  ;;  %s1639_s30 = sshll.u32 %s2316_s10, 4  ;;  %s1640_s30 = int_to_ptr.vmem [resolvable:$true] %s1639_s30 }
 0x3b6   :  { %v1360_v9 = vpack.c.bf16 %v1335_v6, %v1334_v5  ;;  %v1260_v52 = vadd.f32 %v2544_v17, %v1259_v8  ;;  %v1340_v20 = vmax.f32 %v1268_v61, 0.0  ;;  %s2278_s12 = scalar_lea.vmem %s1640_s30, 4096  ;;  %p2283_p3 = scmp.lt.s32.totalorder %s1640_s30, %s1640_s30 }
 0x3b7   :  { %v2014_v11 = vpop.f32.mrf.mxu1  ;;  %p2279_p2 = scmp.ne.s32.totalorder %s1640_s30, %s2278_s12  ;;  %p2284_p4 = scmp.lt.s32.totalorder %s2278_s12, %s2278_s12 }
 0x3b8   :  { %v1271_v12 = vadd.f32 %v2014_v11, %v2544_v17  ;;  %2055 = vmatprep.mubr.bf16.mxu0 %v1360_v9  ;;  %v1338_v41 = vmax.f32 %v1260_v52, 0.0 }
 0x3b9   :  { %v1262_v14 = vpop.f32.mrf.mxu1  ;;  %2056 = vmatmul.mubr.bf16.gmra.mxu0 %v1361_v10  ;;  %p2285_p5 = por %p2284_p4, %p2283_p3 }
 0x3ba   :  { %v1263_v15 = vadd.f32 %v2544_v17, %v1262_v14  ;;  %v1341_v16 = vmax.f32 %v1271_v12, 0.0 }
 0x3bb   :  { %v2017_v18 = vpop.f32.mrf.mxu1  ;;  %p2286_p6 = pnand %p2285_p5, %p2279_p2 }
 0x3bc   :  { %v1339_v19 = vmax.f32 %v1263_v15, 0.0  ;;  %v1363_v23 = vpack.c.bf16 %v1341_v16, %v1340_v20  ;;  %v1284_v25 = vadd.f32 %v2017_v18, %v2544_v17 }
 0x3bd   :  { %v1275_v21 = vpop.f32.mrf.mxu1 }
 0x3be   :  { %v1362_v22 = vpack.c.bf16 %v1339_v19, %v1338_v41  ;;  %v1276_v13 = vadd.f32 %v2544_v17, %v1275_v21  ;;  %v1344_v32 = vmax.f32 %v1284_v25, 0.0 }
 0x3bf   :  { %v2018_v34 = vpop.f32.mrf.mxu1 }
 0x3c0   :  { %v1287_v24 = vadd.f32 %v2018_v34, %v2544_v17  ;;  %2059 = vmatprep.mubr.bf16.mxu0 %v1362_v22  ;;  %v1342_v30 = vmax.f32 %v1276_v13, 0.0 }
 0x3c1   :  { %v1278_v26 = vpop.f32.mrf.mxu1  ;;  %2060 = vmatmul.mubr.bf16.gmra.mxu0 %v1363_v23 }
 0x3c2   :  { %v1279_v27 = vadd.f32 %v2544_v17, %v1278_v26  ;;  %v1345_v28 = vmax.f32 %v1287_v24, 0.0 }
 0x3c3   :  { %v2021_v29 = vpop.f32.mrf.mxu1 }
 0x3c4   :  { %v1343_v31 = vmax.f32 %v1279_v27, 0.0  ;;  %v1365_v36 = vpack.c.bf16 %v1345_v28, %v1344_v32  ;;  %v1300_v40 = vadd.f32 %v2021_v29, %v2544_v17 }
 0x3c5   :  { %v1291_v33 = vpop.f32.mrf.mxu1 }
 0x3c6   :  { %v1364_v35 = vpack.c.bf16 %v1343_v31, %v1342_v30  ;;  %v1292_v39 = vadd.f32 %v2544_v17, %v1291_v33  ;;  %v1348_v50 = vmax.f32 %v1300_v40, 0.0 }
 0x3c7   :  { %v2022_v37 = vpop.f32.mrf.mxu1 }
 0x3c8   :  { %v1303_v42 = vadd.f32 %v2022_v37, %v2544_v17  ;;  %2063 = vmatprep.mubr.bf16.mxu0 %v1364_v35  ;;  %v1346_v48 = vmax.f32 %v1292_v39, 0.0 }
 0x3c9   :  { %v1294_v44 = vpop.f32.mrf.mxu1  ;;  %2064 = vmatmul.mubr.bf16.gmra.mxu0 %v1365_v36 }
 0x3ca   :  { %v1295_v45 = vadd.f32 %v2544_v17, %v1294_v44  ;;  %v1349_v46 = vmax.f32 %v1303_v42, 0.0 }
 0x3cb   :  { %v2025_v47 = vpop.f32.mrf.mxu1 }
 0x3cc   :  { %v1347_v49 = vmax.f32 %v1295_v45, 0.0  ;;  %v1367_v54 = vpack.c.bf16 %v1349_v46, %v1348_v50  ;;  %v1316_v59 = vadd.f32 %v2025_v47, %v2544_v17 }
 0x3cd   :  { %v1307_v51 = vpop.f32.mrf.mxu1 }
 0x3ce   :  { %v1366_v53 = vpack.c.bf16 %v1347_v49, %v1346_v48  ;;  %v1308_v56 = vadd.f32 %v2544_v17, %v1307_v51  ;;  %v1352_v1 = vmax.f32 %v1316_v59, 0.0 }
 0x3cf   :  { %v2026_v55 = vpop.f32.mrf.mxu1 }
 0x3d0   :  { %v1319_v58 = vadd.f32 %v2026_v55, %v2544_v17  ;;  %2067 = vmatprep.mubr.bf16.mxu0 %v1366_v53  ;;  %v1350_v57 = vmax.f32 %v1308_v56, 0.0 }
 0x3d1   :  { %v1310_v60 = vpop.f32.mrf.mxu1  ;;  %2068 = vmatmul.mubr.bf16.gmra.mxu0 %v1367_v54 }
 0x3d2   :  { %v1311_v62 = vadd.f32 %v2544_v17, %v1310_v60  ;;  %v1353_v63 = vmax.f32 %v1319_v58, 0.0 }
 0x3d4   :  { %v1351_v0 = vmax.f32 %v1311_v62, 0.0  ;;  %v1369_v43 = vpack.c.bf16 %v1353_v63, %v1352_v1 }
 0x3d6   :  { %v1368_v38 = vpack.c.bf16 %v1351_v0, %v1350_v57 }
 0x3d8   :  { %2071 = vmatprep.mubr.bf16.mxu0 %v1368_v38 }
 0x3d9   :  { %2072 = vmatmul.mubr.bf16.gmra.mxu0 %v1369_v43 }
 0x461   :  { %v2045_v3 = vpop.f32.mrf.mxu0 }
 0x462   :  { %v1484_v4 = vadd.f32 %v2045_v3, %v2581_v2 }
 0x463   :  { %v1475_v5 = vpop.f32.mrf.mxu0 }
 0x464   :  { %1604 = vst [vmem:[#allocation13 + $0x10] sm:$0xff] %v1484_v4  ;;  %v1476_v17 = vadd.f32 %v2581_v2, %v1475_v5 }
 0x465   :  { %v2046_v6 = vpop.f32.mrf.mxu0 }
 0x466   :  { %1602 = vst [vmem:[#allocation13] sm:$0xff] %v1476_v17  ;;  %v1487_v7 = vadd.f32 %v2046_v6, %v2581_v2 }
 0x467   :  { %v1478_v8 = vpop.f32.mrf.mxu0 }
 0x468   :  { %1605 = vst [vmem:[#allocation13 + $0x18] sm:$0xff] %v1487_v7  ;;  %v1479_v9 = vadd.f32 %v2581_v2, %v1478_v8 }
 0x469   :  { %v2049_v10 = vpop.f32.mrf.mxu0 }
 0x46a   :  { %1603 = vst [vmem:[#allocation13 + $0x8] sm:$0xff] %v1479_v9  ;;  %v1500_v11 = vadd.f32 %v2049_v10, %v2581_v2 }
 0x46b   :  { %v1491_v52 = vpop.f32.mrf.mxu0 }
 0x46c   :  { %1608 = vst [vmem:[#allocation13 + $0x30] sm:$0xff] %v1500_v11  ;;  %v1492_v12 = vadd.f32 %v2581_v2, %v1491_v52 }
 0x46d   :  { %v2050_v61 = vpop.f32.mrf.mxu0 }
 0x46e   :  { %1606 = vst [vmem:[#allocation13 + $0x20] sm:$0xff] %v1492_v12  ;;  %v1503_v14 = vadd.f32 %v2050_v61, %v2581_v2 }
 0x46f   :  { %v1494_v15 = vpop.f32.mrf.mxu0 }
 0x470   :  { %1609 = vst [vmem:[#allocation13 + $0x38] sm:$0xff] %v1503_v14  ;;  %v1495_v16 = vadd.f32 %v2581_v2, %v1494_v15 }
 0x471   :  { %v2053_v18 = vpop.f32.mrf.mxu0 }
 0x472   :  { %1607 = vst [vmem:[#allocation13 + $0x28] sm:$0xff] %v1495_v16  ;;  %v1516_v41 = vadd.f32 %v2053_v18, %v2581_v2 }
 0x473   :  { %v1507_v19 = vpop.f32.mrf.mxu0 }
 0x474   :  { %1612 = vst [vmem:[#allocation13 + $0x50] sm:$0xff] %v1516_v41  ;;  %v1508_v20 = vadd.f32 %v2581_v2, %v1507_v19 }
 0x475   :  { %v2054_v21 = vpop.f32.mrf.mxu0 }
 0x476   :  { %1610 = vst [vmem:[#allocation13 + $0x40] sm:$0xff] %v1508_v20  ;;  %v1519_v22 = vadd.f32 %v2054_v21, %v2581_v2 }
 0x477   :  { %v1510_v23 = vpop.f32.mrf.mxu0 }
 0x478   :  { %1613 = vst [vmem:[#allocation13 + $0x58] sm:$0xff] %v1519_v22  ;;  %v1511_v34 = vadd.f32 %v2581_v2, %v1510_v23 }
 0x479   :  { %v2057_v13 = vpop.f32.mrf.mxu0 }
 0x47a   :  { %1611 = vst [vmem:[#allocation13 + $0x48] sm:$0xff] %v1511_v34  ;;  %v1532_v24 = vadd.f32 %v2057_v13, %v2581_v2 }
 0x47b   :  { %v1523_v25 = vpop.f32.mrf.mxu0 }
 0x47c   :  { %1616 = vst [vmem:[#allocation13 + $0x70] sm:$0xff] %v1532_v24  ;;  %v1524_v26 = vadd.f32 %v2581_v2, %v1523_v25 }
 0x47d   :  { %v2058_v27 = vpop.f32.mrf.mxu0 }
 0x47e   :  { %1614 = vst [vmem:[#allocation13 + $0x60] sm:$0xff] %v1524_v26  ;;  %v1535_v28 = vadd.f32 %v2058_v27, %v2581_v2 }
 0x47f   :  { %v1526_v29 = vpop.f32.mrf.mxu0 }
 0x480   :  { %1617 = vst [vmem:[#allocation13 + $0x78] sm:$0xff] %v1535_v28  ;;  %v1527_v30 = vadd.f32 %v2581_v2, %v1526_v29 }
 0x481   :  { %v2061_v31 = vpop.f32.mrf.mxu0 }
 0x482   :  { %1615 = vst [vmem:[#allocation13 + $0x68] sm:$0xff] %v1527_v30  ;;  %v1548_v32 = vadd.f32 %v2061_v31, %v2581_v2 }
 0x483   :  { %v1539_v33 = vpop.f32.mrf.mxu0 }
 0x484   :  { %1620 = vst [vmem:[#allocation13 + $0x90] sm:$0xff] %v1548_v32  ;;  %v1540_v35 = vadd.f32 %v2581_v2, %v1539_v33 }
 0x485   :  { %v2062_v36 = vpop.f32.mrf.mxu0 }
 0x486   :  { %1618 = vst [vmem:[#allocation13 + $0x80] sm:$0xff] %v1540_v35  ;;  %v1551_v37 = vadd.f32 %v2062_v36, %v2581_v2 }
 0x487   :  { %v1542_v39 = vpop.f32.mrf.mxu0 }
 0x488   :  { %1621 = vst [vmem:[#allocation13 + $0x98] sm:$0xff] %v1551_v37  ;;  %v1543_v42 = vadd.f32 %v2581_v2, %v1542_v39 }
 0x489   :  { %v2065_v40 = vpop.f32.mrf.mxu0 }
 0x48a   :  { %1619 = vst [vmem:[#allocation13 + $0x88] sm:$0xff] %v1543_v42  ;;  %v1564_v44 = vadd.f32 %v2065_v40, %v2581_v2 }
 0x48b   :  { %v1555_v45 = vpop.f32.mrf.mxu0 }
 0x48c   :  { %1624 = vst [vmem:[#allocation13 + $0xb0] sm:$0xff] %v1564_v44  ;;  %v1556_v46 = vadd.f32 %v2581_v2, %v1555_v45 }
 0x48d   :  { %v2066_v47 = vpop.f32.mrf.mxu0 }
 0x48e   :  { %1622 = vst [vmem:[#allocation13 + $0xa0] sm:$0xff] %v1556_v46  ;;  %v1567_v48 = vadd.f32 %v2066_v47, %v2581_v2 }
 0x48f   :  { %v1558_v49 = vpop.f32.mrf.mxu0 }
 0x490   :  { %1625 = vst [vmem:[#allocation13 + $0xb8] sm:$0xff] %v1567_v48  ;;  %v1559_v50 = vadd.f32 %v2581_v2, %v1558_v49 }
 0x491   :  { %v2069_v51 = vpop.f32.mrf.mxu0 }
 0x492   :  { %1623 = vst [vmem:[#allocation13 + $0xa8] sm:$0xff] %v1559_v50  ;;  %v1580_v53 = vadd.f32 %v2069_v51, %v2581_v2 }
 0x493   :  { %v1571_v54 = vpop.f32.mrf.mxu0 }
 0x494   :  { %1628 = vst [vmem:[#allocation13 + $0xd0] sm:$0xff] %v1580_v53  ;;  %v1572_v55 = vadd.f32 %v2581_v2, %v1571_v54 }
 0x495   :  { %v2070_v56 = vpop.f32.mrf.mxu0 }
 0x496   :  { %1626 = vst [vmem:[#allocation13 + $0xc0] sm:$0xff] %v1572_v55  ;;  %v1583_v58 = vadd.f32 %v2070_v56, %v2581_v2 }
 0x497   :  { %v1574_v59 = vpop.f32.mrf.mxu0 }
 0x498   :  { %1629 = vst [vmem:[#allocation13 + $0xd8] sm:$0xff] %v1583_v58  ;;  %v1575_v60 = vadd.f32 %v2581_v2, %v1574_v59 }
 0x499   :  { %v2073_v62 = vpop.f32.mrf.mxu0 }
 0x49a   :  { %1627 = vst [vmem:[#allocation13 + $0xc8] sm:$0xff] %v1575_v60  ;;  %v1596_v63 = vadd.f32 %v2073_v62, %v2581_v2 }
 0x49b   :  { %v1587_v57 = vpop.f32.mrf.mxu0 }
 0x49c   :  { %1632 = vst [vmem:[#allocation13 + $0xf0] sm:$0xff] %v1596_v63  ;;  %v1588_v0 = vadd.f32 %v2581_v2, %v1587_v57 }
 0x49d   :  { %v2074_v1 = vpop.f32.mrf.mxu0 }
 0x49e   :  { %1630 = vst [vmem:[#allocation13 + $0xe0] sm:$0xff] %v1588_v0  ;;  %v1599_v38 = vadd.f32 %v2074_v1, %v2581_v2 }
 0x49f   :  { %v1590_v43 = vpop.f32.mrf.mxu0 }
 0x4a0   :  { %1633 = vst [vmem:[#allocation13 + $0xf8] sm:$0xff] %v1599_v38  ;;  %v1591_v3 = vadd.f32 %v2581_v2, %v1590_v43 }
 0x4a2   :  { %1631 = vst [vmem:[#allocation13 + $0xe8] sm:$0xff] %v1591_v3 }
 0x4a3   :  { %2289 = shalt.err (!%p2286_p6)
}
 0x4a4   :  { %s2317_s13 = smov 128   ;;  %s2318_s1 = smov 8  }
 0x4a5   :  { %1645 = dma.vmem_to_hbm [thread:$0]  %s1640_s30, 4096, %s2629_s11, [#allocation4], %s2317_s13, %s2317_s13, %s2318_s1  }
 0x4a6   :  { %2306 = dma.done.wait [#allocation4], 4096  }
 0x4a7   :  { %2307 = vsyncadd [#allocation4], 4294963200 }
 0x4a8   :  { %1649 = vsyncpa [#allocation3], 1 }
 0x4a9   :  { %1650 = vsyncpa [#allocation6], 1 }
 0x4aa   :  { %1651 = vsyncpa [#allocation9], 1 }
 0x4ab   :  { %1652 = vsyncpa [#allocation12], 1 }
 0x4ac   :  { %1653 = vsyncpa [#allocation4], 1 }

// kernel: tpu_custom_call.1
= control target key start
LH: loop header
LB: loop body
LE: loop exit
PB: predicated region body
PF: predicated region fallthrough
CT: control target
= control target key end

     0   :  { %16 = vsyncpa [#allocation3], 0  ;;  %s2618_s0 = inlined_call_operand.hbm [shape: bf16[256,128], index: 0, kind: input, shape index: {}]   ;;  %s2619_s1 = inlined_call_operand.hbm [shape: bf16[128,128], index: 1, kind: input, shape index: {}]   ;;  %s2620_s2 = inlined_call_operand.vmem [shape: f32[1,128], index: 2, kind: input, shape index: {}]   ;;  %s2621_s3 = inlined_call_operand.hbm [shape: bf16[128,128], index: 3, kind: input, shape index: {}]   ;;  %s2622_s4 = inlined_call_operand.vmem [shape: f32[1,128], index: 4, kind: input, shape index: {}]   ;;  %s2623_s5 = inlined_call_operand.hbm [shape: bf16[128,128], index: 5, kind: input, shape index: {}]   ;;  %s2624_s6 = inlined_call_operand.vmem [shape: f32[1,128], index: 6, kind: input, shape index: {}]   ;;  %s2625_s7 = inlined_call_operand.hbm [shape: bf16[128,128], index: 7, kind: input, shape index: {}]   ;;  %s2626_s8 = inlined_call_operand.vmem [shape: f32[1,128], index: 8, kind: input, shape index: {}]   ;;  %s2627_s9 = inlined_call_operand.hbm [shape: bf16[128,128], index: 9, kind: input, shape index: {}]   ;;  %s2628_s10 = inlined_call_operand.vmem [shape: f32[1,128], index: 10, kind: input, shape index: {}]   ;;  %s2629_s11 = inlined_call_operand.hbm [shape: f32[256,128], index: 11, kind: output, shape index: {}]  }
   0x1   :  { %17 = vsyncpa [#allocation6], 0 }
   0x2   :  { %18 = vsyncpa [#allocation9], 0 }
   0x3   :  { %19 = vsyncpa [#allocation12], 0 }
   0x4   :  { %20 = vsyncpa [#allocation4], 0  ;;  %s2308_s17 = smov [#allocation5]   ;;  %s2309_s19 = smov [#allocation8]  }
   0x5   :  { %s38_s18 = sshll.u32 %s2308_s17, 4  ;;  %s66_s20 = sshll.u32 %s2309_s19, 4  ;;  %s39_s18 = int_to_ptr.vmem [resolvable:$true] %s38_s18  ;;  %s67_s20 = int_to_ptr.vmem [resolvable:$true] %s66_s20 }
   0x6   :  { %s2166_s21 = scalar_lea.vmem %s39_s18, 1024  ;;  %p2171_p1 = scmp.lt.s32.totalorder %s39_s18, %s39_s18 }
   0x7   :  { %p2167_p0 = scmp.ne.s32.totalorder %s39_s18, %s2166_s21  ;;  %p2172_p2 = scmp.lt.s32.totalorder %s2166_s21, %s2166_s21 }
   0x9   :  { %p2173_p3 = por %p2172_p2, %p2171_p1 }
   0xb   :  { %p2174_p4 = pnand %p2173_p3, %p2167_p0 }
   0xd   :  { %2177 = shalt.err (!%p2174_p4)
}
   0xe   :  { %s2310_s22 = smov 64   ;;  %s2311_s23 = smov 4  }
   0xf   :  { %44 = dma.hbm_to_vmem [thread:$0]  %s2619_s1, 1024, %s39_s18, [#allocation6], %s2310_s22, %s2310_s22, %s2311_s23  }
  0x10   :  { %s2186_s26 = scalar_lea.vmem %s67_s20, 1024  ;;  %p2191_p6 = scmp.lt.s32.totalorder %s67_s20, %s67_s20 }
  0x11   :  { %p2187_p5 = scmp.ne.s32.totalorder %s67_s20, %s2186_s26  ;;  %p2192_p7 = scmp.lt.s32.totalorder %s2186_s26, %s2186_s26 }
  0x13   :  { %p2193_p8 = por %p2192_p7, %p2191_p6 }
  0x15   :  { %p2194_p9 = pnand %p2193_p8, %p2187_p5 }
  0x17   :  { %2197 = shalt.err (!%p2194_p9)
}
  0x18   :  { %72 = dma.hbm_to_vmem [thread:$0]  %s2623_s5, 1024, %s67_s20, [#allocation9], %s2310_s22, %s2310_s22, %s2311_s23  }
  0x19   :  { %s2312_s29 = smov [#allocation2]   ;;  %s2313_s12 = smov [#allocation7]  }
  0x1a   :  { %s26_s30 = sshll.u32 %s2312_s29, 4  ;;  %s52_s13 = sshll.u32 %s2313_s12, 4  ;;  %s27_s30 = int_to_ptr.vmem [resolvable:$true] %s26_s30  ;;  %s53_s13 = int_to_ptr.vmem [resolvable:$true] %s52_s13 }
  0x1b   :  { %s2206_s1 = scalar_lea.vmem %s27_s30, 2048  ;;  %p2211_p11 = scmp.lt.s32.totalorder %s27_s30, %s27_s30 }
  0x1c   :  { %p2207_p10 = scmp.ne.s32.totalorder %s27_s30, %s2206_s1  ;;  %p2212_p12 = scmp.lt.s32.totalorder %s2206_s1, %s2206_s1 }
  0x1e   :  { %p2213_p13 = por %p2212_p12, %p2211_p11 }
  0x20   :  { %p2214_p0 = pnand %p2213_p13, %p2207_p10 }
  0x22   :  { %2217 = shalt.err (!%p2214_p0)
}
  0x23   :  { %32 = dma.hbm_to_vmem [thread:$0]  %s2618_s0, 2048, %s27_s30, [#allocation3], %s2310_s22, %s2310_s22, %s2311_s23  }
  0x24   :  { %s2226_s5 = scalar_lea.vmem %s53_s13, 1024  ;;  %p2231_p2 = scmp.lt.s32.totalorder %s53_s13, %s53_s13 }
  0x25   :  { %p2227_p1 = scmp.ne.s32.totalorder %s53_s13, %s2226_s5  ;;  %p2232_p3 = scmp.lt.s32.totalorder %s2226_s5, %s2226_s5 }
  0x27   :  { %p2233_p4 = por %p2232_p3, %p2231_p2 }
  0x29   :  { %p2234_p5 = pnand %p2233_p4, %p2227_p1 }
  0x2b   :  { %2237 = shalt.err (!%p2234_p5)
}
  0x2c   :  { %58 = dma.hbm_to_vmem [thread:$0]  %s2621_s3, 1024, %s53_s13, [#allocation6], %s2310_s22, %s2310_s22, %s2311_s23  }
  0x2d   :  { %s2314_s18 = smov [#allocation10]   ;;  %s2315_s20 = smov [#allocation11]  }
  0x2e   :  { %s80_s19 = sshll.u32 %s2314_s18, 4  ;;  %s94_s21 = sshll.u32 %s2315_s20, 4  ;;  %s81_s19 = int_to_ptr.vmem [resolvable:$true] %s80_s19  ;;  %s95_s21 = int_to_ptr.vmem [resolvable:$true] %s94_s21 }
  0x2f   :  { %s2246_s0 = scalar_lea.vmem %s81_s19, 1024  ;;  %p2251_p7 = scmp.lt.s32.totalorder %s81_s19, %s81_s19 }
  0x30   :  { %p2247_p6 = scmp.ne.s32.totalorder %s81_s19, %s2246_s0  ;;  %p2252_p8 = scmp.lt.s32.totalorder %s2246_s0, %s2246_s0 }
  0x32   :  { %p2253_p9 = por %p2252_p8, %p2251_p7 }
  0x34   :  { %p2254_p10 = pnand %p2253_p9, %p2247_p6 }
  0x36   :  { %2257 = shalt.err (!%p2254_p10)
}
  0x37   :  { %86 = dma.hbm_to_vmem [thread:$0]  %s2625_s7, 1024, %s81_s19, [#allocation9], %s2310_s22, %s2310_s22, %s2311_s23  }
  0x38   :  { %s2266_s3 = scalar_lea.vmem %s95_s21, 1024  ;;  %p2271_p12 = scmp.lt.s32.totalorder %s95_s21, %s95_s21 }
  0x39   :  { %p2267_p11 = scmp.ne.s32.totalorder %s95_s21, %s2266_s3  ;;  %p2272_p13 = scmp.lt.s32.totalorder %s2266_s3, %s2266_s3 }
  0x3b   :  { %p2273_p0 = por %p2272_p13, %p2271_p12 }
  0x3d   :  { %p2274_p1 = pnand %p2273_p0, %p2267_p11 }
  0x3f   :  { %2277 = shalt.err (!%p2274_p1)
}
  0x40   :  { %100 = dma.hbm_to_vmem [thread:$0]  %s2627_s9, 1024, %s95_s21, [#allocation12], %s2310_s22, %s2310_s22, %s2311_s23  }
  0x41   :  { %2298 = dma.done.wait [#allocation3], 2048  }
  0x42   :  { %2299 = vsyncadd [#allocation3], 4294965248 }
  0x43   :  { %2300 = dma.done.wait [#allocation6], 2048  }
  0x44   :  { %2301 = vsyncadd [#allocation6], 4294965248 }
  0x45   :  { %2302 = dma.done.wait [#allocation9], 2048  }
  0x46   :  { %2303 = vsyncadd [#allocation9], 4294965248 }
  0x47   :  { %2304 = dma.done.wait [#allocation12], 1024  }
  0x48   :  { %2305 = vsyncadd [#allocation12], 4294966272  ;;  %v2102_v0 = vld [vmem:[#allocation5 + $0x38] sm:$0xff]   ;;  %v2103_v1 = vld [vmem:[#allocation5 + $0x30] sm:$0xff]  }
  0x49   :  { %1835 = vmatprep.subr.bf16.mxu0 %v2102_v0  ;;  %2075 = vmatprep.subr.bf16.mxu1 %v2102_v0  ;;  %v2104_v2 = vld [vmem:[#allocation5 + $0x28] sm:$0xff]   ;;  %v2105_v3 = vld [vmem:[#allocation5 + $0x20] sm:$0xff]   ;;  %v2106_v5 = vld [vmem:[#allocation5 + $0x18] sm:$0xff]  }
  0x4a   :  { %1836 = vmatpush3.bf16.msra.mxu0 %v2102_v0  ;;  %2083 = vmatpush3.bf16.msra.mxu1 %v2102_v0  ;;  %v2110_v4 = vld [vmem:[#allocation2] sm:$0xff]   ;;  %v2107_v6 = vld [vmem:[#allocation5 + $0x10] sm:$0xff]   ;;  %v2108_v8 = vld [vmem:[#allocation5 + $0x8] sm:$0xff]  }
  0x4b   :  { %1837 = vmatprep.subr.bf16.mxu0 %v2103_v1  ;;  %2076 = vmatprep.subr.bf16.mxu1 %v2103_v1  ;;  %v2118_v7 = vld [vmem:[#allocation2 + $0x40] sm:$0xff]   ;;  %v2111_v10 = vld [vmem:[#allocation2 + $0x8] sm:$0xff]   ;;  %v2126_v12 = vld [vmem:[#allocation7 + $0x38] sm:$0xff]  }
  0x4c   :  { %1851 = vmatprep.mubr.bf16.mxu0 %v2110_v4  ;;  %1867 = vmatprep.mubr.bf16.mxu1 %v2118_v7  ;;  %v2109_v9 = vld [vmem:[#allocation5] sm:$0xff]   ;;  %v2119_v11 = vld [vmem:[#allocation2 + $0x48] sm:$0xff]   ;;  %v2112_v13 = vld [vmem:[#allocation2 + $0x10] sm:$0xff]  }
  0x4d   :  { %v2120_v14 = vld [vmem:[#allocation2 + $0x50] sm:$0xff]   ;;  %v2128_v16 = vld [vmem:[#allocation7 + $0x28] sm:$0xff]   ;;  %v2113_v17 = vld [vmem:[#allocation2 + $0x18] sm:$0xff]  }
  0x4e   :  { %1838 = vmatpush3.bf16.msra.mxu0 %v2103_v1  ;;  %2084 = vmatpush3.bf16.msra.mxu1 %v2103_v1  ;;  %v2127_v15 = vld [vmem:[#allocation7 + $0x30] sm:$0xff]   ;;  %v2121_v18 = vld [vmem:[#allocation2 + $0x58] sm:$0xff]   ;;  %v2114_v19 = vld [vmem:[#allocation2 + $0x20] sm:$0xff]  }
  0x4f   :  { %1839 = vmatprep.subr.bf16.mxu0 %v2104_v2  ;;  %2077 = vmatprep.subr.bf16.mxu1 %v2104_v2  ;;  %v2122_v20 = vld [vmem:[#allocation2 + $0x60] sm:$0xff]   ;;  %v2130_v22 = vld [vmem:[#allocation7 + $0x18] sm:$0xff]   ;;  %v2115_v23 = vld [vmem:[#allocation2 + $0x28] sm:$0xff]  }
  0x50   :  { %v2129_v21 = vld [vmem:[#allocation7 + $0x20] sm:$0xff]   ;;  %v2123_v24 = vld [vmem:[#allocation2 + $0x68] sm:$0xff]   ;;  %v2116_v25 = vld [vmem:[#allocation2 + $0x30] sm:$0xff]  }
  0x51   :  { %v2124_v26 = vld [vmem:[#allocation2 + $0x70] sm:$0xff]   ;;  %v2117_v27 = vld [vmem:[#allocation2 + $0x38] sm:$0xff]   ;;  %v2132_v30 = vld [vmem:[#allocation7 + $0x8] sm:$0xff]  }
  0x52   :  { %1840 = vmatpush3.bf16.msra.mxu0 %v2104_v2  ;;  %2085 = vmatpush3.bf16.msra.mxu1 %v2104_v2  ;;  %v2125_v28 = vld [vmem:[#allocation2 + $0x78] sm:$0xff]   ;;  %v2131_v29 = vld [vmem:[#allocation7 + $0x10] sm:$0xff]   ;;  %v2133_v31 = vld [vmem:[#allocation7] sm:$0xff]  }
  0x53   :  { %1841 = vmatprep.subr.bf16.mxu0 %v2105_v3  ;;  %2078 = vmatprep.subr.bf16.mxu1 %v2105_v3  ;;  %v2134_v32 = vld [vmem:[#allocation8 + $0x38] sm:$0xff]   ;;  %v2135_v33 = vld [vmem:[#allocation8 + $0x30] sm:$0xff]   ;;  %v2136_v34 = vld [vmem:[#allocation8 + $0x28] sm:$0xff]  }
  0x54   :  { %v2137_v35 = vld [vmem:[#allocation8 + $0x20] sm:$0xff]   ;;  %v2138_v36 = vld [vmem:[#allocation8 + $0x18] sm:$0xff]  }
  0x55   :  { %v2420_v41 = vld [vmem:[%s2620_s2] ss:$0 sm:$0xff] }
  0x56   :  { %1842 = vmatpush3.bf16.msra.mxu0 %v2105_v3  ;;  %2086 = vmatpush3.bf16.msra.mxu1 %v2105_v3 }
  0x57   :  { %1843 = vmatprep.subr.bf16.mxu0 %v2106_v5  ;;  %2079 = vmatprep.subr.bf16.mxu1 %v2106_v5 }
  0x5a   :  { %1844 = vmatpush3.bf16.msra.mxu0 %v2106_v5  ;;  %2087 = vmatpush3.bf16.msra.mxu1 %v2106_v5 }
  0x5b   :  { %1845 = vmatprep.subr.bf16.mxu0 %v2107_v6  ;;  %2080 = vmatprep.subr.bf16.mxu1 %v2107_v6 }
  0x5e   :  { %1846 = vmatpush3.bf16.msra.mxu0 %v2107_v6  ;;  %2088 = vmatpush3.bf16.msra.mxu1 %v2107_v6 }
  0x5f   :  { %1847 = vmatprep.subr.bf16.mxu0 %v2108_v8  ;;  %2081 = vmatprep.subr.bf16.mxu1 %v2108_v8 }
  0x62   :  { %1848 = vmatpush3.bf16.msra.mxu0 %v2108_v8  ;;  %2089 = vmatpush3.bf16.msra.mxu1 %v2108_v8 }
  0x63   :  { %1849 = vmatprep.subr.bf16.mxu0 %v2109_v9  ;;  %2082 = vmatprep.subr.bf16.mxu1 %v2109_v9 }
  0x66   :  { %1850 = vmatpush3.bf16.msra.mxu0 %v2109_v9  ;;  %2090 = vmatpush3.bf16.msra.mxu1 %v2109_v9 }
  0x67   :  { %1883 = vmatprep.subr.bf16.mxu1 %v2126_v12  ;;  %1931 = vmatprep.subr.bf16.mxu0 %v2134_v32 }
  0x69   :  { %1852 = vmatmul.mubr.bf16.vlgmr.msra.gmra.mxu0 %v2111_v10  ;;  %1868 = vmatmul.mubr.bf16.vlgmr.msra.gmra.mxu1 %v2119_v11 }
  0x6a   :  { %1855 = vmatprep.mubr.bf16.mxu0 %v2112_v13  ;;  %1871 = vmatprep.mubr.bf16.mxu1 %v2120_v14 }
  0x6b   :  { %1884 = vmatpush3.bf16.msra.mxu1 %v2126_v12  ;;  %1932 = vmatpush3.bf16.msra.mxu0 %v2134_v32 }
  0x6c   :  { %1885 = vmatprep.subr.bf16.mxu1 %v2127_v15  ;;  %1933 = vmatprep.subr.bf16.mxu0 %v2135_v33 }
  0x6f   :  { %1886 = vmatpush3.bf16.msra.mxu1 %v2127_v15  ;;  %1934 = vmatpush3.bf16.msra.mxu0 %v2135_v33 }
  0x70   :  { %1887 = vmatprep.subr.bf16.mxu1 %v2128_v16  ;;  %1935 = vmatprep.subr.bf16.mxu0 %v2136_v34 }
  0x71   :  { %1856 = vmatmul.mubr.bf16.gmra.mxu0 %v2113_v17  ;;  %1872 = vmatmul.mubr.bf16.gmra.mxu1 %v2121_v18 }
  0x72   :  { %1859 = vmatprep.mubr.bf16.mxu0 %v2114_v19  ;;  %1875 = vmatprep.mubr.bf16.mxu1 %v2122_v20 }
  0x73   :  { %1888 = vmatpush3.bf16.msra.mxu1 %v2128_v16  ;;  %1936 = vmatpush3.bf16.msra.mxu0 %v2136_v34 }
  0x74   :  { %1889 = vmatprep.subr.bf16.mxu1 %v2129_v21  ;;  %1937 = vmatprep.subr.bf16.mxu0 %v2137_v35 }
  0x77   :  { %1890 = vmatpush3.bf16.msra.mxu1 %v2129_v21  ;;  %1938 = vmatpush3.bf16.msra.mxu0 %v2137_v35 }
  0x78   :  { %1891 = vmatprep.subr.bf16.mxu1 %v2130_v22  ;;  %1939 = vmatprep.subr.bf16.mxu0 %v2138_v36 }
  0x79   :  { %1860 = vmatmul.mubr.bf16.gmra.mxu0 %v2115_v23  ;;  %1876 = vmatmul.mubr.bf16.gmra.mxu1 %v2123_v24 }
  0x7a   :  { %1863 = vmatprep.mubr.bf16.mxu0 %v2116_v25  ;;  %1879 = vmatprep.mubr.bf16.mxu1 %v2124_v26 }
  0x7b   :  { %1892 = vmatpush3.bf16.msra.mxu1 %v2130_v22  ;;  %1940 = vmatpush3.bf16.msra.mxu0 %v2138_v36 }
  0x7c   :  { %1893 = vmatprep.subr.bf16.mxu1 %v2131_v29 }
  0x7f   :  { %1894 = vmatpush3.bf16.msra.mxu1 %v2131_v29 }
  0x80   :  { %1895 = vmatprep.subr.bf16.mxu1 %v2132_v30 }
  0x81   :  { %1864 = vmatmul.mubr.bf16.gmra.mxu0 %v2117_v27  ;;  %1880 = vmatmul.mubr.bf16.gmra.mxu1 %v2125_v28 }
  0x83   :  { %1896 = vmatpush3.bf16.msra.mxu1 %v2132_v30 }
  0x84   :  { %1897 = vmatprep.subr.bf16.mxu1 %v2133_v31 }
  0x87   :  { %1898 = vmatpush3.bf16.msra.mxu1 %v2133_v31 }
 0x129   :  { %v1853_v37 = vpop.f32.mrf.mxu0  ;;  %v2415_v38 = vpop.f32.mrf.mxu1 }
 0x12a   :  { %v364_v46 = vadd.f32 %v1853_v37, %v2420_v41 }
 0x12b   :  { %v355_v39 = vpop.f32.mrf.mxu0  ;;  %v419_v40 = vpop.f32.mrf.mxu1 }
 0x12c   :  { %v356_v44 = vadd.f32 %v2420_v41, %v355_v39  ;;  %v484_v55 = vmax.f32 %v364_v46, 0.0  ;;  %v420_v27 = vadd.f32 %v2420_v41, %v419_v40 }
 0x12d   :  { %v1854_v42 = vpop.f32.mrf.mxu0  ;;  %v2422_v43 = vpop.f32.mrf.mxu1 }
 0x12e   :  { %v367_v45 = vadd.f32 %v1854_v42, %v2420_v41  ;;  %v482_v53 = vmax.f32 %v356_v44, 0.0  ;;  %v498_v36 = vmax.f32 %v420_v27, 0.0  ;;  %v2143_v27 = vld [vmem:[#allocation10 + $0x30] sm:$0xff]  }
 0x12f   :  { %v358_v47 = vpop.f32.mrf.mxu0  ;;  %v422_v48 = vpop.f32.mrf.mxu1 }
 0x130   :  { %v359_v49 = vadd.f32 %v2420_v41, %v358_v47  ;;  %v485_v50 = vmax.f32 %v367_v45, 0.0  ;;  %v423_v28 = vadd.f32 %v2420_v41, %v422_v48 }
 0x131   :  { %v1857_v51 = vpop.f32.mrf.mxu0  ;;  %v2428_v52 = vpop.f32.mrf.mxu1 }
 0x132   :  { %v483_v54 = vmax.f32 %v359_v49, 0.0  ;;  %v515_v59 = vpack.c.bf16 %v485_v50, %v484_v55  ;;  %v380_v0 = vadd.f32 %v1857_v51, %v2420_v41  ;;  %v499_v39 = vmax.f32 %v423_v28, 0.0  ;;  %v2145_v28 = vld [vmem:[#allocation10 + $0x20] sm:$0xff]  }
 0x133   :  { %v371_v56 = vpop.f32.mrf.mxu0  ;;  %v435_v57 = vpop.f32.mrf.mxu1  ;;  %v428_v51 = vadd.f32 %v2415_v38, %v2420_v41  ;;  %v444_v38 = vadd.f32 %v2428_v52, %v2420_v41 }
 0x134   :  { %v514_v58 = vpack.c.bf16 %v483_v54, %v482_v53  ;;  %v372_v62 = vadd.f32 %v2420_v41, %v371_v56  ;;  %v488_v8 = vmax.f32 %v380_v0, 0.0  ;;  %v522_v48 = vpack.c.bf16 %v499_v39, %v498_v36 }
 0x135   :  { %v1858_v60 = vpop.f32.mrf.mxu0  ;;  %v2430_v61 = vpop.f32.mrf.mxu1  ;;  %v436_v49 = vadd.f32 %v2420_v41, %v435_v57  ;;  %v431_v54 = vadd.f32 %v2422_v43, %v2420_v41 }
 0x136   :  { %v383_v63 = vadd.f32 %v1858_v60, %v2420_v41  ;;  %1899 = vmatprep.mubr.bf16.mxu1 %v514_v58  ;;  %v486_v6 = vmax.f32 %v372_v62, 0.0  ;;  %v447_v43 = vadd.f32 %v2430_v61, %v2420_v41 }
 0x137   :  { %v374_v1 = vpop.f32.mrf.mxu0  ;;  %1900 = vmatmul.mubr.bf16.vlgmr.msra.gmra.mxu1 %v515_v59  ;;  %v438_v5 = vpop.f32.mrf.mxu1  ;;  %v502_v56 = vmax.f32 %v436_v49, 0.0  ;;  %v500_v59 = vmax.f32 %v428_v51, 0.0  ;;  %v501_v60 = vmax.f32 %v431_v54, 0.0 }
 0x138   :  { %v375_v2 = vadd.f32 %v2420_v41, %v374_v1  ;;  %v489_v3 = vmax.f32 %v383_v63, 0.0  ;;  %v439_v50 = vadd.f32 %v2420_v41, %v438_v5  ;;  %v504_v5 = vmax.f32 %v444_v38, 0.0 }
 0x139   :  { %v1861_v4 = vpop.f32.mrf.mxu0  ;;  %v2436_v13 = vpop.f32.mrf.mxu1  ;;  %v523_v1 = vpack.c.bf16 %v501_v60, %v500_v59 }
 0x13a   :  { %v487_v7 = vmax.f32 %v375_v2, 0.0  ;;  %v517_v11 = vpack.c.bf16 %v489_v3, %v488_v8  ;;  %v396_v16 = vadd.f32 %v1861_v4, %v2420_v41  ;;  %v503_v58 = vmax.f32 %v439_v50, 0.0 }
 0x13b   :  { %v387_v9 = vpop.f32.mrf.mxu0  ;;  %v451_v21 = vpop.f32.mrf.mxu1  ;;  %v460_v52 = vadd.f32 %v2436_v13, %v2420_v41  ;;  %v2139_v13 = vld [vmem:[#allocation8 + $0x10] sm:$0xff]  }
 0x13c   :  { %v516_v10 = vpack.c.bf16 %v487_v7, %v486_v6  ;;  %v388_v14 = vadd.f32 %v2420_v41, %v387_v9  ;;  %v492_v24 = vmax.f32 %v396_v16, 0.0  ;;  %v524_v63 = vpack.c.bf16 %v503_v58, %v502_v56  ;;  %1941 = vmatprep.subr.bf16.mxu0 %v2139_v13 }
 0x13d   :  { %v1862_v12 = vpop.f32.mrf.mxu0  ;;  %v1878_v31 = vpop.f32.mrf.mxu1  ;;  %v452_v57 = vadd.f32 %v2420_v41, %v451_v21  ;;  %v505_v6 = vmax.f32 %v447_v43, 0.0  ;;  %1942 = vmatpush3.bf16.msra.mxu0 %v2139_v13 }
 0x13e   :  { %v399_v15 = vadd.f32 %v1862_v12, %v2420_v41  ;;  %1903 = vmatprep.mubr.bf16.mxu1 %v516_v10  ;;  %v490_v22 = vmax.f32 %v388_v14, 0.0  ;;  %v463_v12 = vadd.f32 %v1878_v31, %v2420_v41  ;;  %v2148_v31 = vld [vmem:[#allocation10 + $0x8] sm:$0xff]  }
 0x13f   :  { %v390_v17 = vpop.f32.mrf.mxu0  ;;  %1904 = vmatmul.mubr.bf16.gmra.mxu1 %v517_v11  ;;  %v454_v40 = vpop.f32.mrf.mxu1  ;;  %v506_v3 = vmax.f32 %v452_v57, 0.0  ;;  %v525_v11 = vpack.c.bf16 %v505_v6, %v504_v5 }
 0x140   :  { %v391_v18 = vadd.f32 %v2420_v41, %v390_v17  ;;  %v493_v19 = vmax.f32 %v399_v15, 0.0  ;;  %v455_v0 = vadd.f32 %v2420_v41, %v454_v40  ;;  %v508_v15 = vmax.f32 %v460_v52, 0.0 }
 0x141   :  { %v1865_v20 = vpop.f32.mrf.mxu0  ;;  %v1881_v55 = vpop.f32.mrf.mxu1  ;;  %v509_v16 = vmax.f32 %v463_v12, 0.0 }
 0x142   :  { %v491_v23 = vmax.f32 %v391_v18, 0.0  ;;  %v519_v29 = vpack.c.bf16 %v493_v19, %v492_v24  ;;  %v412_v34 = vadd.f32 %v1865_v20, %v2420_v41  ;;  %v507_v4 = vmax.f32 %v455_v0, 0.0  ;;  %v2140_v24 = vld [vmem:[#allocation8 + $0x8] sm:$0xff]  }
 0x143   :  { %v403_v25 = vpop.f32.mrf.mxu0  ;;  %v467_v62 = vpop.f32.mrf.mxu1  ;;  %v527_v18 = vpack.c.bf16 %v509_v16, %v508_v15  ;;  %v476_v19 = vadd.f32 %v1881_v55, %v2420_v41  ;;  %1943 = vmatprep.subr.bf16.mxu0 %v2140_v24 }
 0x144   :  { %v518_v26 = vpack.c.bf16 %v491_v23, %v490_v22  ;;  %v404_v32 = vadd.f32 %v2420_v41, %v403_v25  ;;  %v496_v46 = vmax.f32 %v412_v34, 0.0  ;;  %v526_v8 = vpack.c.bf16 %v507_v4, %v506_v3  ;;  %1944 = vmatpush3.bf16.msra.mxu0 %v2140_v24  ;;  %v2141_v25 = vld [vmem:[#allocation8] sm:$0xff]  }
 0x145   :  { %v1866_v30 = vpop.f32.mrf.mxu0  ;;  %v1882_v2 = vpop.f32.mrf.mxu1  ;;  %v468_v9 = vadd.f32 %v2420_v41, %v467_v62  ;;  %v512_v21 = vmax.f32 %v476_v19, 0.0  ;;  %1945 = vmatprep.subr.bf16.mxu0 %v2141_v25  ;;  %v2470_v34 = vld [vmem:[%s2622_s4] ss:$0 sm:$0xff] }
 0x146   :  { %v415_v33 = vadd.f32 %v1866_v30, %v2420_v41  ;;  %1907 = vmatprep.mubr.bf16.mxu1 %v518_v26  ;;  %v494_v44 = vmax.f32 %v404_v32, 0.0  ;;  %v479_v20 = vadd.f32 %v1882_v2, %v2420_v41  ;;  %v2142_v26 = vld [vmem:[#allocation10 + $0x38] sm:$0xff]   ;;  %v2147_v30 = vld [vmem:[#allocation10 + $0x10] sm:$0xff]  }
 0x147   :  { %v406_v35 = vpop.f32.mrf.mxu0  ;;  %1908 = vmatmul.mubr.bf16.gmra.mxu1 %v519_v29  ;;  %v470_v7 = vpop.f32.mrf.mxu1  ;;  %v510_v61 = vmax.f32 %v468_v9, 0.0  ;;  %1979 = vmatprep.subr.bf16.mxu1 %v2142_v26  ;;  %v2146_v29 = vld [vmem:[#allocation10 + $0x18] sm:$0xff]  }
 0x148   :  { %v407_v37 = vadd.f32 %v2420_v41, %v406_v35  ;;  %v497_v42 = vmax.f32 %v415_v33, 0.0  ;;  %v471_v10 = vadd.f32 %v2420_v41, %v470_v7  ;;  %v513_v22 = vmax.f32 %v479_v20, 0.0  ;;  %1946 = vmatpush3.bf16.msra.mxu0 %v2141_v25  ;;  %1980 = vmatpush3.bf16.msra.mxu1 %v2142_v26  ;;  %v2144_v41 = vld [vmem:[#allocation10 + $0x28] sm:$0xff]  }
 0x149   :  { %1981 = vmatprep.subr.bf16.mxu1 %v2143_v27 }
 0x14a   :  { %v495_v45 = vmax.f32 %v407_v37, 0.0  ;;  %v521_v53 = vpack.c.bf16 %v497_v42, %v496_v46  ;;  %v511_v14 = vmax.f32 %v471_v10, 0.0  ;;  %v529_v23 = vpack.c.bf16 %v513_v22, %v512_v21 }
 0x14c   :  { %v520_v47 = vpack.c.bf16 %v495_v45, %v494_v44  ;;  %v528_v17 = vpack.c.bf16 %v511_v14, %v510_v61  ;;  %1982 = vmatpush3.bf16.msra.mxu1 %v2143_v27 }
 0x14d   :  { %1983 = vmatprep.subr.bf16.mxu1 %v2144_v41 }
 0x14e   :  { %1911 = vmatprep.mubr.bf16.mxu1 %v520_v47 }
 0x14f   :  { %1912 = vmatmul.mubr.bf16.gmra.mxu1 %v521_v53 }
 0x150   :  { %1915 = vmatprep.mubr.bf16.mxu1 %v522_v48  ;;  %1984 = vmatpush3.bf16.msra.mxu1 %v2144_v41 }
 0x151   :  { %1985 = vmatprep.subr.bf16.mxu1 %v2145_v28 }
 0x154   :  { %1986 = vmatpush3.bf16.msra.mxu1 %v2145_v28 }
 0x155   :  { %1987 = vmatprep.subr.bf16.mxu1 %v2146_v29 }
 0x157   :  { %1916 = vmatmul.mubr.bf16.gmra.mxu1 %v523_v1 }
 0x158   :  { %1919 = vmatprep.mubr.bf16.mxu1 %v524_v63  ;;  %1988 = vmatpush3.bf16.msra.mxu1 %v2146_v29 }
 0x159   :  { %1989 = vmatprep.subr.bf16.mxu1 %v2147_v30 }
 0x15c   :  { %1990 = vmatpush3.bf16.msra.mxu1 %v2147_v30 }
 0x15d   :  { %1991 = vmatprep.subr.bf16.mxu1 %v2148_v31 }
 0x15f   :  { %1920 = vmatmul.mubr.bf16.gmra.mxu1 %v525_v11 }
 0x160   :  { %1923 = vmatprep.mubr.bf16.mxu1 %v526_v8  ;;  %1992 = vmatpush3.bf16.msra.mxu1 %v2148_v31 }
 0x167   :  { %1924 = vmatmul.mubr.bf16.gmra.mxu1 %v527_v18 }
 0x168   :  { %1927 = vmatprep.mubr.bf16.mxu1 %v528_v17 }
 0x16f   :  { %1928 = vmatmul.mubr.bf16.gmra.mxu1 %v529_v23 }
 0x1f7   :  { %v1901_v32 = vpop.f32.mrf.mxu1 }
 0x1f8   :  { %v644_v39 = vadd.f32 %v1901_v32, %v2470_v34 }
 0x1f9   :  { %v635_v33 = vpop.f32.mrf.mxu1 }
 0x1fa   :  { %v636_v36 = vadd.f32 %v2470_v34, %v635_v33  ;;  %v764_v48 = vmax.f32 %v644_v39, 0.0 }
 0x1fb   :  { %v1902_v35 = vpop.f32.mrf.mxu1 }
 0x1fc   :  { %v647_v37 = vadd.f32 %v1902_v35, %v2470_v34  ;;  %v762_v46 = vmax.f32 %v636_v36, 0.0 }
 0x1fd   :  { %v638_v42 = vpop.f32.mrf.mxu1 }
 0x1fe   :  { %v639_v40 = vadd.f32 %v2470_v34, %v638_v42  ;;  %v765_v44 = vmax.f32 %v647_v37, 0.0 }
 0x1ff   :  { %v1905_v45 = vpop.f32.mrf.mxu1 }
 0x200   :  { %v763_v47 = vmax.f32 %v639_v40, 0.0  ;;  %v795_v51 = vpack.c.bf16 %v765_v44, %v764_v48  ;;  %v660_v56 = vadd.f32 %v1905_v45, %v2470_v34 }
 0x201   :  { %v651_v49 = vpop.f32.mrf.mxu1 }
 0x202   :  { %v794_v50 = vpack.c.bf16 %v763_v47, %v762_v46  ;;  %v652_v54 = vadd.f32 %v2470_v34, %v651_v49  ;;  %v768_v0 = vmax.f32 %v660_v56, 0.0 }
 0x203   :  { %v1906_v53 = vpop.f32.mrf.mxu1 }
 0x204   :  { %v663_v55 = vadd.f32 %v1906_v53, %v2470_v34  ;;  %1947 = vmatprep.mubr.bf16.mxu0 %v794_v50  ;;  %v766_v63 = vmax.f32 %v652_v54, 0.0 }
 0x205   :  { %v654_v58 = vpop.f32.mrf.mxu1  ;;  %1948 = vmatmul.mubr.bf16.vlgmr.msra.gmra.mxu0 %v795_v51 }
 0x206   :  { %v655_v59 = vadd.f32 %v2470_v34, %v654_v58  ;;  %v769_v60 = vmax.f32 %v663_v55, 0.0 }
 0x207   :  { %v1909_v62 = vpop.f32.mrf.mxu1 }
 0x208   :  { %v767_v57 = vmax.f32 %v655_v59, 0.0  ;;  %v797_v43 = vpack.c.bf16 %v769_v60, %v768_v0  ;;  %v676_v5 = vadd.f32 %v1909_v62, %v2470_v34 }
 0x209   :  { %v667_v1 = vpop.f32.mrf.mxu1 }
 0x20a   :  { %v796_v38 = vpack.c.bf16 %v767_v57, %v766_v63  ;;  %v668_v3 = vadd.f32 %v2470_v34, %v667_v1  ;;  %v772_v52 = vmax.f32 %v676_v5, 0.0 }
 0x20b   :  { %v1910_v2 = vpop.f32.mrf.mxu1 }
 0x20c   :  { %v679_v4 = vadd.f32 %v1910_v2, %v2470_v34  ;;  %1951 = vmatprep.mubr.bf16.mxu0 %v796_v38  ;;  %v770_v10 = vmax.f32 %v668_v3, 0.0 }
 0x20d   :  { %v670_v6 = vpop.f32.mrf.mxu1  ;;  %1952 = vmatmul.mubr.bf16.gmra.mxu0 %v797_v43 }
 0x20e   :  { %v671_v7 = vadd.f32 %v2470_v34, %v670_v6  ;;  %v773_v8 = vmax.f32 %v679_v4, 0.0 }
 0x20f   :  { %v1913_v9 = vpop.f32.mrf.mxu1 }
 0x210   :  { %v771_v11 = vmax.f32 %v671_v7, 0.0  ;;  %v799_v14 = vpack.c.bf16 %v773_v8, %v772_v52  ;;  %v692_v18 = vadd.f32 %v1913_v9, %v2470_v34 }
 0x211   :  { %v683_v12 = vpop.f32.mrf.mxu1 }
 0x212   :  { %v798_v61 = vpack.c.bf16 %v771_v11, %v770_v10  ;;  %v684_v16 = vadd.f32 %v2470_v34, %v683_v12  ;;  %v776_v24 = vmax.f32 %v692_v18, 0.0 }
 0x213   :  { %v1914_v15 = vpop.f32.mrf.mxu1 }
 0x214   :  { %v695_v17 = vadd.f32 %v1914_v15, %v2470_v34  ;;  %1955 = vmatprep.mubr.bf16.mxu0 %v798_v61  ;;  %v774_v23 = vmax.f32 %v684_v16, 0.0 }
 0x215   :  { %v686_v19 = vpop.f32.mrf.mxu1  ;;  %1956 = vmatmul.mubr.bf16.gmra.mxu0 %v799_v14 }
 0x216   :  { %v687_v20 = vadd.f32 %v2470_v34, %v686_v19  ;;  %v777_v21 = vmax.f32 %v695_v17, 0.0 }
 0x217   :  { %v1917_v22 = vpop.f32.mrf.mxu1 }
 0x218   :  { %v775_v13 = vmax.f32 %v687_v20, 0.0  ;;  %v801_v27 = vpack.c.bf16 %v777_v21, %v776_v24  ;;  %v708_v30 = vadd.f32 %v1917_v22, %v2470_v34  ;;  %v2149_v20 = vld [vmem:[#allocation10] sm:$0xff]   ;;  %v2150_v21 = vld [vmem:[#allocation11 + $0x38] sm:$0xff]   ;;  %v2151_v22 = vld [vmem:[#allocation11 + $0x30] sm:$0xff]  }
 0x219   :  { %v699_v25 = vpop.f32.mrf.mxu1  ;;  %1993 = vmatprep.subr.bf16.mxu1 %v2149_v20  ;;  %2027 = vmatprep.subr.bf16.mxu0 %v2150_v21  ;;  %v2155_v24 = vld [vmem:[#allocation11 + $0x10] sm:$0xff]  }
 0x21a   :  { %v800_v26 = vpack.c.bf16 %v775_v13, %v774_v23  ;;  %v700_v28 = vadd.f32 %v2470_v34, %v699_v25  ;;  %v780_v39 = vmax.f32 %v708_v30, 0.0  ;;  %1994 = vmatpush3.bf16.msra.mxu1 %v2149_v20  ;;  %2028 = vmatpush3.bf16.msra.mxu0 %v2150_v21  ;;  %v2152_v23 = vld [vmem:[#allocation11 + $0x28] sm:$0xff]   ;;  %v2154_v13 = vld [vmem:[#allocation11 + $0x18] sm:$0xff]  }
 0x21b   :  { %v1918_v41 = vpop.f32.mrf.mxu1  ;;  %2029 = vmatprep.subr.bf16.mxu0 %v2151_v22  ;;  %v2156_v25 = vld [vmem:[#allocation11 + $0x8] sm:$0xff]  }
 0x21c   :  { %v711_v29 = vadd.f32 %v1918_v41, %v2470_v34  ;;  %1959 = vmatprep.mubr.bf16.mxu0 %v800_v26  ;;  %v778_v36 = vmax.f32 %v700_v28, 0.0  ;;  %v2507_v41 = vld [vmem:[%s2624_s6] ss:$0 sm:$0xff] }
 0x21d   :  { %v702_v31 = vpop.f32.mrf.mxu1  ;;  %1960 = vmatmul.mubr.bf16.gmra.mxu0 %v801_v27 }
 0x21e   :  { %v703_v32 = vadd.f32 %v2470_v34, %v702_v31  ;;  %v781_v33 = vmax.f32 %v711_v29, 0.0  ;;  %2030 = vmatpush3.bf16.msra.mxu0 %v2151_v22 }
 0x21f   :  { %v1921_v35 = vpop.f32.mrf.mxu1  ;;  %2031 = vmatprep.subr.bf16.mxu0 %v2152_v23 }
 0x220   :  { %v779_v37 = vmax.f32 %v703_v32, 0.0  ;;  %v803_v44 = vpack.c.bf16 %v781_v33, %v780_v39  ;;  %v724_v48 = vadd.f32 %v1921_v35, %v2470_v34 }
 0x221   :  { %v715_v42 = vpop.f32.mrf.mxu1 }
 0x222   :  { %v802_v40 = vpack.c.bf16 %v779_v37, %v778_v36  ;;  %v716_v46 = vadd.f32 %v2470_v34, %v715_v42  ;;  %v784_v56 = vmax.f32 %v724_v48, 0.0  ;;  %2032 = vmatpush3.bf16.msra.mxu0 %v2152_v23 }
 0x223   :  { %v1922_v45 = vpop.f32.mrf.mxu1 }
 0x224   :  { %v727_v47 = vadd.f32 %v1922_v45, %v2470_v34  ;;  %1963 = vmatprep.mubr.bf16.mxu0 %v802_v40  ;;  %v782_v54 = vmax.f32 %v716_v46, 0.0 }
 0x225   :  { %v718_v49 = vpop.f32.mrf.mxu1  ;;  %1964 = vmatmul.mubr.bf16.gmra.mxu0 %v803_v44 }
 0x226   :  { %v719_v50 = vadd.f32 %v2470_v34, %v718_v49  ;;  %v785_v51 = vmax.f32 %v727_v47, 0.0 }
 0x227   :  { %v1925_v53 = vpop.f32.mrf.mxu1 }
 0x228   :  { %v783_v55 = vmax.f32 %v719_v50, 0.0  ;;  %v805_v60 = vpack.c.bf16 %v785_v51, %v784_v56  ;;  %v740_v0 = vadd.f32 %v1925_v53, %v2470_v34 }
 0x229   :  { %v731_v58 = vpop.f32.mrf.mxu1 }
 0x22a   :  { %v804_v59 = vpack.c.bf16 %v783_v55, %v782_v54  ;;  %v732_v63 = vadd.f32 %v2470_v34, %v731_v58  ;;  %v788_v5 = vmax.f32 %v740_v0, 0.0 }
 0x22b   :  { %v1926_v62 = vpop.f32.mrf.mxu1 }
 0x22c   :  { %v743_v57 = vadd.f32 %v1926_v62, %v2470_v34  ;;  %1967 = vmatprep.mubr.bf16.mxu0 %v804_v59  ;;  %v786_v3 = vmax.f32 %v732_v63, 0.0 }
 0x22d   :  { %v734_v1 = vpop.f32.mrf.mxu1  ;;  %1968 = vmatmul.mubr.bf16.gmra.mxu0 %v805_v60 }
 0x22e   :  { %v735_v38 = vadd.f32 %v2470_v34, %v734_v1  ;;  %v789_v43 = vmax.f32 %v743_v57, 0.0 }
 0x22f   :  { %v1929_v2 = vpop.f32.mrf.mxu1 }
 0x230   :  { %v787_v4 = vmax.f32 %v735_v38, 0.0  ;;  %v807_v8 = vpack.c.bf16 %v789_v43, %v788_v5  ;;  %v756_v52 = vadd.f32 %v1929_v2, %v2470_v34 }
 0x231   :  { %v747_v6 = vpop.f32.mrf.mxu1 }
 0x232   :  { %v806_v7 = vpack.c.bf16 %v787_v4, %v786_v3  ;;  %v748_v10 = vadd.f32 %v2470_v34, %v747_v6  ;;  %v792_v17 = vmax.f32 %v756_v52, 0.0 }
 0x233   :  { %v1930_v9 = vpop.f32.mrf.mxu1 }
 0x234   :  { %v759_v11 = vadd.f32 %v1930_v9, %v2470_v34  ;;  %1971 = vmatprep.mubr.bf16.mxu0 %v806_v7  ;;  %v790_v15 = vmax.f32 %v748_v10, 0.0 }
 0x235   :  { %v750_v12 = vpop.f32.mrf.mxu1  ;;  %1972 = vmatmul.mubr.bf16.gmra.mxu0 %v807_v8 }
 0x236   :  { %v751_v61 = vadd.f32 %v2470_v34, %v750_v12  ;;  %v793_v14 = vmax.f32 %v759_v11, 0.0  ;;  %v2153_v34 = vld [vmem:[#allocation11 + $0x20] sm:$0xff]  }
 0x237   :  { %2033 = vmatprep.subr.bf16.mxu0 %v2153_v34 }
 0x238   :  { %v791_v16 = vmax.f32 %v751_v61, 0.0  ;;  %v809_v19 = vpack.c.bf16 %v793_v14, %v792_v17  ;;  %2034 = vmatpush3.bf16.msra.mxu0 %v2153_v34 }
 0x239   :  { %2035 = vmatprep.subr.bf16.mxu0 %v2154_v13 }
 0x23a   :  { %v808_v18 = vpack.c.bf16 %v791_v16, %v790_v15 }
 0x23c   :  { %1975 = vmatprep.mubr.bf16.mxu0 %v808_v18  ;;  %2036 = vmatpush3.bf16.msra.mxu0 %v2154_v13 }
 0x23d   :  { %1976 = vmatmul.mubr.bf16.gmra.mxu0 %v809_v19  ;;  %2037 = vmatprep.subr.bf16.mxu0 %v2155_v24 }
 0x240   :  { %2038 = vmatpush3.bf16.msra.mxu0 %v2155_v24 }
 0x241   :  { %2039 = vmatprep.subr.bf16.mxu0 %v2156_v25 }
 0x244   :  { %2040 = vmatpush3.bf16.msra.mxu0 %v2156_v25 }
 0x2c5   :  { %v1949_v26 = vpop.f32.mrf.mxu0 }
 0x2c6   :  { %v924_v31 = vadd.f32 %v1949_v26, %v2507_v41 }
 0x2c7   :  { %v915_v27 = vpop.f32.mrf.mxu0 }
 0x2c8   :  { %v916_v29 = vadd.f32 %v2507_v41, %v915_v27  ;;  %v1044_v42 = vmax.f32 %v924_v31, 0.0 }
 0x2c9   :  { %v1950_v28 = vpop.f32.mrf.mxu0 }
 0x2ca   :  { %v927_v30 = vadd.f32 %v1950_v28, %v2507_v41  ;;  %v1042_v37 = vmax.f32 %v916_v29, 0.0 }
 0x2cb   :  { %v918_v32 = vpop.f32.mrf.mxu0 }
 0x2cc   :  { %v919_v33 = vadd.f32 %v2507_v41, %v918_v32  ;;  %v1045_v35 = vmax.f32 %v927_v30, 0.0 }
 0x2cd   :  { %v1953_v36 = vpop.f32.mrf.mxu0 }
 0x2ce   :  { %v1043_v39 = vmax.f32 %v919_v33, 0.0  ;;  %v1075_v45 = vpack.c.bf16 %v1045_v35, %v1044_v42  ;;  %v940_v49 = vadd.f32 %v1953_v36, %v2507_v41 }
 0x2cf   :  { %v931_v40 = vpop.f32.mrf.mxu0 }
 0x2d0   :  { %v1074_v44 = vpack.c.bf16 %v1043_v39, %v1042_v37  ;;  %v932_v47 = vadd.f32 %v2507_v41, %v931_v40  ;;  %v1048_v58 = vmax.f32 %v940_v49, 0.0 }
 0x2d1   :  { %v1954_v46 = vpop.f32.mrf.mxu0 }
 0x2d2   :  { %v943_v48 = vadd.f32 %v1954_v46, %v2507_v41  ;;  %1995 = vmatprep.mubr.bf16.mxu1 %v1074_v44  ;;  %v1046_v55 = vmax.f32 %v932_v47, 0.0 }
 0x2d3   :  { %v934_v50 = vpop.f32.mrf.mxu0  ;;  %1996 = vmatmul.mubr.bf16.vlgmr.msra.gmra.mxu1 %v1075_v45 }
 0x2d4   :  { %v935_v51 = vadd.f32 %v2507_v41, %v934_v50  ;;  %v1049_v53 = vmax.f32 %v943_v48, 0.0 }
 0x2d5   :  { %v1957_v54 = vpop.f32.mrf.mxu0 }
 0x2d6   :  { %v1047_v56 = vmax.f32 %v935_v51, 0.0  ;;  %v1077_v62 = vpack.c.bf16 %v1049_v53, %v1048_v58  ;;  %v956_v1 = vadd.f32 %v1957_v54, %v2507_v41 }
 0x2d7   :  { %v947_v59 = vpop.f32.mrf.mxu0 }
 0x2d8   :  { %v1076_v60 = vpack.c.bf16 %v1047_v56, %v1046_v55  ;;  %v948_v57 = vadd.f32 %v2507_v41, %v947_v59  ;;  %v1052_v6 = vmax.f32 %v956_v1, 0.0 }
 0x2d9   :  { %v1958_v63 = vpop.f32.mrf.mxu0 }
 0x2da   :  { %v959_v0 = vadd.f32 %v1958_v63, %v2507_v41  ;;  %1999 = vmatprep.mubr.bf16.mxu1 %v1076_v60  ;;  %v1050_v4 = vmax.f32 %v948_v57, 0.0 }
 0x2db   :  { %v950_v38 = vpop.f32.mrf.mxu0  ;;  %2000 = vmatmul.mubr.bf16.gmra.mxu1 %v1077_v62 }
 0x2dc   :  { %v951_v43 = vadd.f32 %v2507_v41, %v950_v38  ;;  %v1053_v2 = vmax.f32 %v959_v0, 0.0 }
 0x2dd   :  { %v1961_v3 = vpop.f32.mrf.mxu0 }
 0x2de   :  { %v1051_v5 = vmax.f32 %v951_v43, 0.0  ;;  %v1079_v9 = vpack.c.bf16 %v1053_v2, %v1052_v6  ;;  %v972_v12 = vadd.f32 %v1961_v3, %v2507_v41 }
 0x2df   :  { %v963_v7 = vpop.f32.mrf.mxu0 }
 0x2e0   :  { %v1078_v8 = vpack.c.bf16 %v1051_v5, %v1050_v4  ;;  %v964_v11 = vadd.f32 %v2507_v41, %v963_v7  ;;  %v1056_v19 = vmax.f32 %v972_v12, 0.0 }
 0x2e1   :  { %v1962_v10 = vpop.f32.mrf.mxu0 }
 0x2e2   :  { %v975_v52 = vadd.f32 %v1962_v10, %v2507_v41  ;;  %2003 = vmatprep.mubr.bf16.mxu1 %v1078_v8  ;;  %v1054_v17 = vmax.f32 %v964_v11, 0.0 }
 0x2e3   :  { %v966_v61 = vpop.f32.mrf.mxu0  ;;  %2004 = vmatmul.mubr.bf16.gmra.mxu1 %v1079_v9 }
 0x2e4   :  { %v967_v14 = vadd.f32 %v2507_v41, %v966_v61  ;;  %v1057_v15 = vmax.f32 %v975_v52, 0.0 }
 0x2e5   :  { %v1965_v16 = vpop.f32.mrf.mxu0 }
 0x2e6   :  { %v1055_v18 = vmax.f32 %v967_v14, 0.0  ;;  %v1081_v22 = vpack.c.bf16 %v1057_v15, %v1056_v19  ;;  %v988_v24 = vadd.f32 %v1965_v16, %v2507_v41  ;;  %v2157_v14 = vld [vmem:[#allocation11] sm:$0xff]  }
 0x2e7   :  { %v979_v20 = vpop.f32.mrf.mxu0  ;;  %2041 = vmatprep.subr.bf16.mxu0 %v2157_v14 }
 0x2e8   :  { %v1080_v21 = vpack.c.bf16 %v1055_v18, %v1054_v17  ;;  %v980_v34 = vadd.f32 %v2507_v41, %v979_v20  ;;  %v1060_v31 = vmax.f32 %v988_v24, 0.0  ;;  %2042 = vmatpush3.bf16.msra.mxu0 %v2157_v14  ;;  %v2544_v17 = vld [vmem:[%s2626_s8] ss:$0 sm:$0xff] }
 0x2e9   :  { %v1966_v23 = vpop.f32.mrf.mxu0 }
 0x2ea   :  { %v991_v13 = vadd.f32 %v1966_v23, %v2507_v41  ;;  %2007 = vmatprep.mubr.bf16.mxu1 %v1080_v21  ;;  %v1058_v29 = vmax.f32 %v980_v34, 0.0 }
 0x2eb   :  { %v982_v25 = vpop.f32.mrf.mxu0  ;;  %2008 = vmatmul.mubr.bf16.gmra.mxu1 %v1081_v22 }
 0x2ec   :  { %v983_v26 = vadd.f32 %v2507_v41, %v982_v25  ;;  %v1061_v27 = vmax.f32 %v991_v13, 0.0 }
 0x2ed   :  { %v1969_v28 = vpop.f32.mrf.mxu0 }
 0x2ee   :  { %v1059_v30 = vmax.f32 %v983_v26, 0.0  ;;  %v1083_v35 = vpack.c.bf16 %v1061_v27, %v1060_v31  ;;  %v1004_v42 = vadd.f32 %v1969_v28, %v2507_v41 }
 0x2ef   :  { %v995_v32 = vpop.f32.mrf.mxu0 }
 0x2f0   :  { %v1082_v33 = vpack.c.bf16 %v1059_v30, %v1058_v29  ;;  %v996_v37 = vadd.f32 %v2507_v41, %v995_v32  ;;  %v1064_v49 = vmax.f32 %v1004_v42, 0.0 }
 0x2f1   :  { %v1970_v36 = vpop.f32.mrf.mxu0 }
 0x2f2   :  { %v1007_v39 = vadd.f32 %v1970_v36, %v2507_v41  ;;  %2011 = vmatprep.mubr.bf16.mxu1 %v1082_v33  ;;  %v1062_v47 = vmax.f32 %v996_v37, 0.0 }
 0x2f3   :  { %v998_v40 = vpop.f32.mrf.mxu0  ;;  %2012 = vmatmul.mubr.bf16.gmra.mxu1 %v1083_v35 }
 0x2f4   :  { %v999_v44 = vadd.f32 %v2507_v41, %v998_v40  ;;  %v1065_v45 = vmax.f32 %v1007_v39, 0.0 }
 0x2f5   :  { %v1973_v46 = vpop.f32.mrf.mxu0 }
 0x2f6   :  { %v1063_v48 = vmax.f32 %v999_v44, 0.0  ;;  %v1085_v53 = vpack.c.bf16 %v1065_v45, %v1064_v49  ;;  %v1020_v58 = vadd.f32 %v1973_v46, %v2507_v41 }
 0x2f7   :  { %v1011_v50 = vpop.f32.mrf.mxu0 }
 0x2f8   :  { %v1084_v51 = vpack.c.bf16 %v1063_v48, %v1062_v47  ;;  %v1012_v55 = vadd.f32 %v2507_v41, %v1011_v50  ;;  %v1068_v1 = vmax.f32 %v1020_v58, 0.0 }
 0x2f9   :  { %v1974_v54 = vpop.f32.mrf.mxu0 }
 0x2fa   :  { %v1023_v56 = vadd.f32 %v1974_v54, %v2507_v41  ;;  %2015 = vmatprep.mubr.bf16.mxu1 %v1084_v51  ;;  %v1066_v57 = vmax.f32 %v1012_v55, 0.0 }
 0x2fb   :  { %v1014_v59 = vpop.f32.mrf.mxu0  ;;  %2016 = vmatmul.mubr.bf16.gmra.mxu1 %v1085_v53 }
 0x2fc   :  { %v1015_v60 = vadd.f32 %v2507_v41, %v1014_v59  ;;  %v1069_v62 = vmax.f32 %v1023_v56, 0.0 }
 0x2fd   :  { %v1977_v63 = vpop.f32.mrf.mxu0 }
 0x2fe   :  { %v1067_v0 = vmax.f32 %v1015_v60, 0.0  ;;  %v1087_v2 = vpack.c.bf16 %v1069_v62, %v1068_v1  ;;  %v1036_v6 = vadd.f32 %v1977_v63, %v2507_v41 }
 0x2ff   :  { %v1027_v38 = vpop.f32.mrf.mxu0 }
 0x300   :  { %v1086_v43 = vpack.c.bf16 %v1067_v0, %v1066_v57  ;;  %v1028_v4 = vadd.f32 %v2507_v41, %v1027_v38  ;;  %v1072_v52 = vmax.f32 %v1036_v6, 0.0 }
 0x301   :  { %v1978_v3 = vpop.f32.mrf.mxu0 }
 0x302   :  { %v1039_v5 = vadd.f32 %v1978_v3, %v2507_v41  ;;  %2019 = vmatprep.mubr.bf16.mxu1 %v1086_v43  ;;  %v1070_v10 = vmax.f32 %v1028_v4, 0.0 }
 0x303   :  { %v1030_v7 = vpop.f32.mrf.mxu0  ;;  %2020 = vmatmul.mubr.bf16.gmra.mxu1 %v1087_v2 }
 0x304   :  { %v1031_v8 = vadd.f32 %v2507_v41, %v1030_v7  ;;  %v1073_v9 = vmax.f32 %v1039_v5, 0.0 }
 0x306   :  { %v1071_v11 = vmax.f32 %v1031_v8, 0.0  ;;  %v1089_v61 = vpack.c.bf16 %v1073_v9, %v1072_v52 }
 0x308   :  { %v1088_v12 = vpack.c.bf16 %v1071_v11, %v1070_v10 }
 0x30a   :  { %2023 = vmatprep.mubr.bf16.mxu1 %v1088_v12 }
 0x30b   :  { %2024 = vmatmul.mubr.bf16.gmra.mxu1 %v1089_v61 }
 0x393   :  { %v1997_v15 = vpop.f32.mrf.mxu1 }
 0x394   :  { %v1204_v20 = vadd.f32 %v1997_v15, %v2544_v17 }
 0x395   :  { %v1195_v16 = vpop.f32.mrf.mxu1 }
 0x396   :  { %v1196_v41 = vadd.f32 %v2544_v17, %v1195_v16  ;;  %v1324_v25 = vmax.f32 %v1204_v20, 0.0 }
 0x397   :  { %v1998_v18 = vpop.f32.mrf.mxu1 }
 0x398   :  { %v1207_v19 = vadd.f32 %v1998_v18, %v2544_v17  ;;  %v1322_v13 = vmax.f32 %v1196_v41, 0.0 }
 0x399   :  { %v1198_v21 = vpop.f32.mrf.mxu1 }
 0x39a   :  { %v1199_v22 = vadd.f32 %v2544_v17, %v1198_v21  ;;  %v1325_v23 = vmax.f32 %v1207_v19, 0.0 }
 0x39b   :  { %v2001_v34 = vpop.f32.mrf.mxu1 }
 0x39c   :  { %v1323_v24 = vmax.f32 %v1199_v22, 0.0  ;;  %v1355_v28 = vpack.c.bf16 %v1325_v23, %v1324_v25  ;;  %v1220_v32 = vadd.f32 %v2001_v34, %v2544_v17 }
 0x39d   :  { %v1211_v26 = vpop.f32.mrf.mxu1 }
 0x39e   :  { %v1354_v27 = vpack.c.bf16 %v1323_v24, %v1322_v13  ;;  %v1212_v30 = vadd.f32 %v2544_v17, %v1211_v26  ;;  %v1328_v40 = vmax.f32 %v1220_v32, 0.0 }
 0x39f   :  { %v2002_v29 = vpop.f32.mrf.mxu1 }
 0x3a0   :  { %v1223_v31 = vadd.f32 %v2002_v29, %v2544_v17  ;;  %2043 = vmatprep.mubr.bf16.mxu0 %v1354_v27  ;;  %v1326_v39 = vmax.f32 %v1212_v30, 0.0 }
 0x3a1   :  { %v1214_v33 = vpop.f32.mrf.mxu1  ;;  %2044 = vmatmul.mubr.bf16.vlgmr.msra.gmra.mxu0 %v1355_v28 }
 0x3a2   :  { %v1215_v35 = vadd.f32 %v2544_v17, %v1214_v33  ;;  %v1329_v36 = vmax.f32 %v1223_v31, 0.0 }
 0x3a3   :  { %v2005_v37 = vpop.f32.mrf.mxu1 }
 0x3a4   :  { %v1327_v42 = vmax.f32 %v1215_v35, 0.0  ;;  %v1357_v46 = vpack.c.bf16 %v1329_v36, %v1328_v40  ;;  %v1236_v50 = vadd.f32 %v2005_v37, %v2544_v17 }
 0x3a5   :  { %v1227_v44 = vpop.f32.mrf.mxu1 }
 0x3a6   :  { %v1356_v45 = vpack.c.bf16 %v1327_v42, %v1326_v39  ;;  %v1228_v48 = vadd.f32 %v2544_v17, %v1227_v44  ;;  %v1332_v59 = vmax.f32 %v1236_v50, 0.0 }
 0x3a7   :  { %v2006_v47 = vpop.f32.mrf.mxu1 }
 0x3a8   :  { %v1239_v49 = vadd.f32 %v2006_v47, %v2544_v17  ;;  %2047 = vmatprep.mubr.bf16.mxu0 %v1356_v45  ;;  %v1330_v56 = vmax.f32 %v1228_v48, 0.0 }
 0x3a9   :  { %v1230_v51 = vpop.f32.mrf.mxu1  ;;  %2048 = vmatmul.mubr.bf16.gmra.mxu0 %v1357_v46 }
 0x3aa   :  { %v1231_v53 = vadd.f32 %v2544_v17, %v1230_v51  ;;  %v1333_v54 = vmax.f32 %v1239_v49, 0.0 }
 0x3ab   :  { %v2009_v55 = vpop.f32.mrf.mxu1 }
 0x3ac   :  { %v1331_v58 = vmax.f32 %v1231_v53, 0.0  ;;  %v1359_v63 = vpack.c.bf16 %v1333_v54, %v1332_v59  ;;  %v1252_v38 = vadd.f32 %v2009_v55, %v2544_v17 }
 0x3ad   :  { %v1243_v60 = vpop.f32.mrf.mxu1 }
 0x3ae   :  { %v1358_v62 = vpack.c.bf16 %v1331_v58, %v1330_v56  ;;  %v1244_v0 = vadd.f32 %v2544_v17, %v1243_v60  ;;  %v1336_v7 = vmax.f32 %v1252_v38, 0.0 }
 0x3af   :  { %v2010_v57 = vpop.f32.mrf.mxu1 }
 0x3b0   :  { %v1255_v1 = vadd.f32 %v2010_v57, %v2544_v17  ;;  %2051 = vmatprep.mubr.bf16.mxu0 %v1358_v62  ;;  %v1334_v5 = vmax.f32 %v1244_v0, 0.0 }
 0x3b1   :  { %v1246_v43 = vpop.f32.mrf.mxu1  ;;  %2052 = vmatmul.mubr.bf16.gmra.mxu0 %v1359_v63 }
 0x3b2   :  { %v1247_v2 = vadd.f32 %v2544_v17, %v1246_v43  ;;  %v1337_v3 = vmax.f32 %v1255_v1, 0.0 }
 0x3b3   :  { %v2013_v4 = vpop.f32.mrf.mxu1 }
 0x3b4   :  { %v1335_v6 = vmax.f32 %v1247_v2, 0.0  ;;  %v1361_v10 = vpack.c.bf16 %v1337_v3, %v1336_v7  ;;  %v1268_v61 = vadd.f32 %v2013_v4, %v2544_v17  ;;  %v2581_v2 = vld [vmem:[%s2628_s10] ss:$0 sm:$0xff]  ;;  %s2316_s10 = smov [#allocation13]  }
 0x3b5   :  { %v1259_v8 = vpop.f32.mrf.mxu1  ;;  %s1639_s30 = sshll.u32 %s2316_s10, 4  ;;  %s1640_s30 = int_to_ptr.vmem [resolvable:$true] %s1639_s30 }
 0x3b6   :  { %v1360_v9 = vpack.c.bf16 %v1335_v6, %v1334_v5  ;;  %v1260_v52 = vadd.f32 %v2544_v17, %v1259_v8  ;;  %v1340_v20 = vmax.f32 %v1268_v61, 0.0  ;;  %s2278_s12 = scalar_lea.vmem %s1640_s30, 4096  ;;  %p2283_p3 = scmp.lt.s32.totalorder %s1640_s30, %s1640_s30 }
 0x3b7   :  { %v2014_v11 = vpop.f32.mrf.mxu1  ;;  %p2279_p2 = scmp.ne.s32.totalorder %s1640_s30, %s2278_s12  ;;  %p2284_p4 = scmp.lt.s32.totalorder %s2278_s12, %s2278_s12 }
 0x3b8   :  { %v1271_v12 = vadd.f32 %v2014_v11, %v2544_v17  ;;  %2055 = vmatprep.mubr.bf16.mxu0 %v1360_v9  ;;  %v1338_v41 = vmax.f32 %v1260_v52, 0.0 }
 0x3b9   :  { %v1262_v14 = vpop.f32.mrf.mxu1  ;;  %2056 = vmatmul.mubr.bf16.gmra.mxu0 %v1361_v10  ;;  %p2285_p5 = por %p2284_p4, %p2283_p3 }
 0x3ba   :  { %v1263_v15 = vadd.f32 %v2544_v17, %v1262_v14  ;;  %v1341_v16 = vmax.f32 %v1271_v12, 0.0 }
 0x3bb   :  { %v2017_v18 = vpop.f32.mrf.mxu1  ;;  %p2286_p6 = pnand %p2285_p5, %p2279_p2 }
 0x3bc   :  { %v1339_v19 = vmax.f32 %v1263_v15, 0.0  ;;  %v1363_v23 = vpack.c.bf16 %v1341_v16, %v1340_v20  ;;  %v1284_v25 = vadd.f32 %v2017_v18, %v2544_v17 }
 0x3bd   :  { %v1275_v21 = vpop.f32.mrf.mxu1 }
 0x3be   :  { %v1362_v22 = vpack.c.bf16 %v1339_v19, %v1338_v41  ;;  %v1276_v13 = vadd.f32 %v2544_v17, %v1275_v21  ;;  %v1344_v32 = vmax.f32 %v1284_v25, 0.0 }
 0x3bf   :  { %v2018_v34 = vpop.f32.mrf.mxu1 }
 0x3c0   :  { %v1287_v24 = vadd.f32 %v2018_v34, %v2544_v17  ;;  %2059 = vmatprep.mubr.bf16.mxu0 %v1362_v22  ;;  %v1342_v30 = vmax.f32 %v1276_v13, 0.0 }
 0x3c1   :  { %v1278_v26 = vpop.f32.mrf.mxu1  ;;  %2060 = vmatmul.mubr.bf16.gmra.mxu0 %v1363_v23 }
 0x3c2   :  { %v1279_v27 = vadd.f32 %v2544_v17, %v1278_v26  ;;  %v1345_v28 = vmax.f32 %v1287_v24, 0.0 }
 0x3c3   :  { %v2021_v29 = vpop.f32.mrf.mxu1 }
 0x3c4   :  { %v1343_v31 = vmax.f32 %v1279_v27, 0.0  ;;  %v1365_v36 = vpack.c.bf16 %v1345_v28, %v1344_v32  ;;  %v1300_v40 = vadd.f32 %v2021_v29, %v2544_v17 }
 0x3c5   :  { %v1291_v33 = vpop.f32.mrf.mxu1 }
 0x3c6   :  { %v1364_v35 = vpack.c.bf16 %v1343_v31, %v1342_v30  ;;  %v1292_v39 = vadd.f32 %v2544_v17, %v1291_v33  ;;  %v1348_v50 = vmax.f32 %v1300_v40, 0.0 }
 0x3c7   :  { %v2022_v37 = vpop.f32.mrf.mxu1 }
 0x3c8   :  { %v1303_v42 = vadd.f32 %v2022_v37, %v2544_v17  ;;  %2063 = vmatprep.mubr.bf16.mxu0 %v1364_v35  ;;  %v1346_v48 = vmax.f32 %v1292_v39, 0.0 }
 0x3c9   :  { %v1294_v44 = vpop.f32.mrf.mxu1  ;;  %2064 = vmatmul.mubr.bf16.gmra.mxu0 %v1365_v36 }
 0x3ca   :  { %v1295_v45 = vadd.f32 %v2544_v17, %v1294_v44  ;;  %v1349_v46 = vmax.f32 %v1303_v42, 0.0 }
 0x3cb   :  { %v2025_v47 = vpop.f32.mrf.mxu1 }
 0x3cc   :  { %v1347_v49 = vmax.f32 %v1295_v45, 0.0  ;;  %v1367_v54 = vpack.c.bf16 %v1349_v46, %v1348_v50  ;;  %v1316_v59 = vadd.f32 %v2025_v47, %v2544_v17 }
 0x3cd   :  { %v1307_v51 = vpop.f32.mrf.mxu1 }
 0x3ce   :  { %v1366_v53 = vpack.c.bf16 %v1347_v49, %v1346_v48  ;;  %v1308_v56 = vadd.f32 %v2544_v17, %v1307_v51  ;;  %v1352_v1 = vmax.f32 %v1316_v59, 0.0 }
 0x3cf   :  { %v2026_v55 = vpop.f32.mrf.mxu1 }
 0x3d0   :  { %v1319_v58 = vadd.f32 %v2026_v55, %v2544_v17  ;;  %2067 = vmatprep.mubr.bf16.mxu0 %v1366_v53  ;;  %v1350_v57 = vmax.f32 %v1308_v56, 0.0 }
 0x3d1   :  { %v1310_v60 = vpop.f32.mrf.mxu1  ;;  %2068 = vmatmul.mubr.bf16.gmra.mxu0 %v1367_v54 }
 0x3d2   :  { %v1311_v62 = vadd.f32 %v2544_v17, %v1310_v60  ;;  %v1353_v63 = vmax.f32 %v1319_v58, 0.0 }
 0x3d4   :  { %v1351_v0 = vmax.f32 %v1311_v62, 0.0  ;;  %v1369_v43 = vpack.c.bf16 %v1353_v63, %v1352_v1 }
 0x3d6   :  { %v1368_v38 = vpack.c.bf16 %v1351_v0, %v1350_v57 }
 0x3d8   :  { %2071 = vmatprep.mubr.bf16.mxu0 %v1368_v38 }
 0x3d9   :  { %2072 = vmatmul.mubr.bf16.gmra.mxu0 %v1369_v43 }
 0x461   :  { %v2045_v3 = vpop.f32.mrf.mxu0 }
 0x462   :  { %v1484_v4 = vadd.f32 %v2045_v3, %v2581_v2 }
 0x463   :  { %v1475_v5 = vpop.f32.mrf.mxu0 }
 0x464   :  { %1604 = vst [vmem:[#allocation13 + $0x10] sm:$0xff] %v1484_v4  ;;  %v1476_v17 = vadd.f32 %v2581_v2, %v1475_v5 }
 0x465   :  { %v2046_v6 = vpop.f32.mrf.mxu0 }
 0x466   :  { %1602 = vst [vmem:[#allocation13] sm:$0xff] %v1476_v17  ;;  %v1487_v7 = vadd.f32 %v2046_v6, %v2581_v2 }
 0x467   :  { %v1478_v8 = vpop.f32.mrf.mxu0 }
 0x468   :  { %1605 = vst [vmem:[#allocation13 + $0x18] sm:$0xff] %v1487_v7  ;;  %v1479_v9 = vadd.f32 %v2581_v2, %v1478_v8 }
 0x469   :  { %v2049_v10 = vpop.f32.mrf.mxu0 }
 0x46a   :  { %1603 = vst [vmem:[#allocation13 + $0x8] sm:$0xff] %v1479_v9  ;;  %v1500_v11 = vadd.f32 %v2049_v10, %v2581_v2 }
 0x46b   :  { %v1491_v52 = vpop.f32.mrf.mxu0 }
 0x46c   :  { %1608 = vst [vmem:[#allocation13 + $0x30] sm:$0xff] %v1500_v11  ;;  %v1492_v12 = vadd.f32 %v2581_v2, %v1491_v52 }
 0x46d   :  { %v2050_v61 = vpop.f32.mrf.mxu0 }
 0x46e   :  { %1606 = vst [vmem:[#allocation13 + $0x20] sm:$0xff] %v1492_v12  ;;  %v1503_v14 = vadd.f32 %v2050_v61, %v2581_v2 }
 0x46f   :  { %v1494_v15 = vpop.f32.mrf.mxu0 }
 0x470   :  { %1609 = vst [vmem:[#allocation13 + $0x38] sm:$0xff] %v1503_v14  ;;  %v1495_v16 = vadd.f32 %v2581_v2, %v1494_v15 }
 0x471   :  { %v2053_v18 = vpop.f32.mrf.mxu0 }
 0x472   :  { %1607 = vst [vmem:[#allocation13 + $0x28] sm:$0xff] %v1495_v16  ;;  %v1516_v41 = vadd.f32 %v2053_v18, %v2581_v2 }
 0x473   :  { %v1507_v19 = vpop.f32.mrf.mxu0 }
 0x474   :  { %1612 = vst [vmem:[#allocation13 + $0x50] sm:$0xff] %v1516_v41  ;;  %v1508_v20 = vadd.f32 %v2581_v2, %v1507_v19 }
 0x475   :  { %v2054_v21 = vpop.f32.mrf.mxu0 }
 0x476   :  { %1610 = vst [vmem:[#allocation13 + $0x40] sm:$0xff] %v1508_v20  ;;  %v1519_v22 = vadd.f32 %v2054_v21, %v2581_v2 }
 0x477   :  { %v1510_v23 = vpop.f32.mrf.mxu0 }
 0x478   :  { %1613 = vst [vmem:[#allocation13 + $0x58] sm:$0xff] %v1519_v22  ;;  %v1511_v34 = vadd.f32 %v2581_v2, %v1510_v23 }
 0x479   :  { %v2057_v13 = vpop.f32.mrf.mxu0 }
 0x47a   :  { %1611 = vst [vmem:[#allocation13 + $0x48] sm:$0xff] %v1511_v34  ;;  %v1532_v24 = vadd.f32 %v2057_v13, %v2581_v2 }
 0x47b   :  { %v1523_v25 = vpop.f32.mrf.mxu0 }
 0x47c   :  { %1616 = vst [vmem:[#allocation13 + $0x70] sm:$0xff] %v1532_v24  ;;  %v1524_v26 = vadd.f32 %v2581_v2, %v1523_v25 }
 0x47d   :  { %v2058_v27 = vpop.f32.mrf.mxu0 }
 0x47e   :  { %1614 = vst [vmem:[#allocation13 + $0x60] sm:$0xff] %v1524_v26  ;;  %v1535_v28 = vadd.f32 %v2058_v27, %v2581_v2 }
 0x47f   :  { %v1526_v29 = vpop.f32.mrf.mxu0 }
 0x480   :  { %1617 = vst [vmem:[#allocation13 + $0x78] sm:$0xff] %v1535_v28  ;;  %v1527_v30 = vadd.f32 %v2581_v2, %v1526_v29 }
 0x481   :  { %v2061_v31 = vpop.f32.mrf.mxu0 }
 0x482   :  { %1615 = vst [vmem:[#allocation13 + $0x68] sm:$0xff] %v1527_v30  ;;  %v1548_v32 = vadd.f32 %v2061_v31, %v2581_v2 }
 0x483   :  { %v1539_v33 = vpop.f32.mrf.mxu0 }
 0x484   :  { %1620 = vst [vmem:[#allocation13 + $0x90] sm:$0xff] %v1548_v32  ;;  %v1540_v35 = vadd.f32 %v2581_v2, %v1539_v33 }
 0x485   :  { %v2062_v36 = vpop.f32.mrf.mxu0 }
 0x486   :  { %1618 = vst [vmem:[#allocation13 + $0x80] sm:$0xff] %v1540_v35  ;;  %v1551_v37 = vadd.f32 %v2062_v36, %v2581_v2 }
 0x487   :  { %v1542_v39 = vpop.f32.mrf.mxu0 }
 0x488   :  { %1621 = vst [vmem:[#allocation13 + $0x98] sm:$0xff] %v1551_v37  ;;  %v1543_v42 = vadd.f32 %v2581_v2, %v1542_v39 }
 0x489   :  { %v2065_v40 = vpop.f32.mrf.mxu0 }
 0x48a   :  { %1619 = vst [vmem:[#allocation13 + $0x88] sm:$0xff] %v1543_v42  ;;  %v1564_v44 = vadd.f32 %v2065_v40, %v2581_v2 }
 0x48b   :  { %v1555_v45 = vpop.f32.mrf.mxu0 }
 0x48c   :  { %1624 = vst [vmem:[#allocation13 + $0xb0] sm:$0xff] %v1564_v44  ;;  %v1556_v46 = vadd.f32 %v2581_v2, %v1555_v45 }
 0x48d   :  { %v2066_v47 = vpop.f32.mrf.mxu0 }
 0x48e   :  { %1622 = vst [vmem:[#allocation13 + $0xa0] sm:$0xff] %v1556_v46  ;;  %v1567_v48 = vadd.f32 %v2066_v47, %v2581_v2 }
 0x48f   :  { %v1558_v49 = vpop.f32.mrf.mxu0 }
 0x490   :  { %1625 = vst [vmem:[#allocation13 + $0xb8] sm:$0xff] %v1567_v48  ;;  %v1559_v50 = vadd.f32 %v2581_v2, %v1558_v49 }
 0x491   :  { %v2069_v51 = vpop.f32.mrf.mxu0 }
 0x492   :  { %1623 = vst [vmem:[#allocation13 + $0xa8] sm:$0xff] %v1559_v50  ;;  %v1580_v53 = vadd.f32 %v2069_v51, %v2581_v2 }
 0x493   :  { %v1571_v54 = vpop.f32.mrf.mxu0 }
 0x494   :  { %1628 = vst [vmem:[#allocation13 + $0xd0] sm:$0xff] %v1580_v53  ;;  %v1572_v55 = vadd.f32 %v2581_v2, %v1571_v54 }
 0x495   :  { %v2070_v56 = vpop.f32.mrf.mxu0 }
 0x496   :  { %1626 = vst [vmem:[#allocation13 + $0xc0] sm:$0xff] %v1572_v55  ;;  %v1583_v58 = vadd.f32 %v2070_v56, %v2581_v2 }
 0x497   :  { %v1574_v59 = vpop.f32.mrf.mxu0 }
 0x498   :  { %1629 = vst [vmem:[#allocation13 + $0xd8] sm:$0xff] %v1583_v58  ;;  %v1575_v60 = vadd.f32 %v2581_v2, %v1574_v59 }
 0x499   :  { %v2073_v62 = vpop.f32.mrf.mxu0 }
 0x49a   :  { %1627 = vst [vmem:[#allocation13 + $0xc8] sm:$0xff] %v1575_v60  ;;  %v1596_v63 = vadd.f32 %v2073_v62, %v2581_v2 }
 0x49b   :  { %v1587_v57 = vpop.f32.mrf.mxu0 }
 0x49c   :  { %1632 = vst [vmem:[#allocation13 + $0xf0] sm:$0xff] %v1596_v63  ;;  %v1588_v0 = vadd.f32 %v2581_v2, %v1587_v57 }
 0x49d   :  { %v2074_v1 = vpop.f32.mrf.mxu0 }
 0x49e   :  { %1630 = vst [vmem:[#allocation13 + $0xe0] sm:$0xff] %v1588_v0  ;;  %v1599_v38 = vadd.f32 %v2074_v1, %v2581_v2 }
 0x49f   :  { %v1590_v43 = vpop.f32.mrf.mxu0 }
 0x4a0   :  { %1633 = vst [vmem:[#allocation13 + $0xf8] sm:$0xff] %v1599_v38  ;;  %v1591_v3 = vadd.f32 %v2581_v2, %v1590_v43 }
 0x4a2   :  { %1631 = vst [vmem:[#allocation13 + $0xe8] sm:$0xff] %v1591_v3 }
 0x4a3   :  { %2289 = shalt.err (!%p2286_p6)
}
 0x4a4   :  { %s2317_s13 = smov 128   ;;  %s2318_s1 = smov 8  }
 0x4a5   :  { %1645 = dma.vmem_to_hbm [thread:$0]  %s1640_s30, 4096, %s2629_s11, [#allocation4], %s2317_s13, %s2317_s13, %s2318_s1  }
 0x4a6   :  { %2306 = dma.done.wait [#allocation4], 4096  }
 0x4a7   :  { %2307 = vsyncadd [#allocation4], 4294963200 }
 0x4a8   :  { %1649 = vsyncpa [#allocation3], 1 }
 0x4a9   :  { %1650 = vsyncpa [#allocation6], 1 }
 0x4aa   :  { %1651 = vsyncpa [#allocation9], 1 }
 0x4ab   :  { %1652 = vsyncpa [#allocation12], 1 }
 0x4ac   :  { %1653 = vsyncpa [#allocation4], 1 }

</bundles_post_ra>
